<compile_context>
chip_gen: v6e
topology: v6e:2x2x1
jax: 0.10.0
libtpu: 0.0.40
codegen_flags: <defaults>
</compile_context>

<pallas_src>
import functools
import math

import jax
import jax.numpy as jnp
from jax.experimental import pallas as pl
from jax.experimental.pallas import tpu as pltpu

MXU_DTYPE = jnp.bfloat16   # MXU operand dtype (accumulation is always f32)


# ------------------------------ fused kernel --------------------------------

def _fused_kernel(*refs, H, W, block_cfg):
    # refs = [masks, x_up, (w1, w2, [ws]) per block, aff, out]
    #   masks : (8, M) f32        per-tap 0/1 boundary masks (constant)
    #   x_up  : (1, 1, M) f32     upsampled input, NCHW-flat, M = H*W
    #   w1    : (cout, 9*cin)     bf16 (f32 when cin==1), BN1 scale folded
    #   w2    : (cout, 9*cout)    bf16, BN2 scale folded
    #   ws    : (cout, cin)       1x1 shortcut, BN scale folded (if in != out)
    #   aff   : (1, n, cmax, 8)   f32 packed affine terms per batch/block:
    #           col0=b1  col1=gamma  col2=gamma*b2+beta  col3=bs
    #           last block: col4=proj_w  (row0,col5)=proj_b
    it = iter(refs)
    m_ref = next(it)
    x_ref = next(it)
    wrefs = []
    for (_cin, _cout, has_sc) in block_cfg:
        w1 = next(it)
        w2 = next(it)
        ws = next(it) if has_sc else None
        wrefs.append((w1, w2, ws))
    aff_ref = next(it)
    o_ref = next(it)

    M = H * W
    masks = m_ref[...]                                   # (8, M) f32, {0,1}

    def rolled_cols(a):
        # a: (C, M) f32 -> 9 rolled copies, out-of-image taps zeroed (input-side).
        cols = []
        mi = 0
        for dh in (-1, 0, 1):
            for dw in (-1, 0, 1):
                off = dh * W + dw
                r = a if off == 0 else pltpu.roll(a, shift=(-off) % M, axis=1)
                if not (dh == 0 and dw == 0):
                    r = r * masks[mi:mi + 1, :]
                    mi += 1
                cols.append(r)
        return cols

    def conv3x3(a, w_ref, cin_):
        # a: (cin_, M) f32  ->  (cout, M) f32
        cols = rolled_cols(a)
        if cin_ == 1:
            # degenerate K=9 outer product: keep on the VPU, f32 throughout
            w = w_ref[...].astype(jnp.float32)           # (cout, 9)
            acc = w[:, 0:1] * cols[0]
            for t in range(1, 9):
                acc = acc + w[:, t:t + 1] * cols[t]
            return acc
        # single MXU matmul: (cout, 9*cin) x (9*cin, M); one f32->bf16 cast
        xcol = jnp.concatenate(cols, axis=0).astype(MXU_DTYPE)
        return jnp.dot(w_ref[...], xcol, preferred_element_type=jnp.float32)

    h = x_ref[0].astype(jnp.float32)                     # (1, M)
    affv = None
    for i, ((cin, cout, has_sc), (w1, w2, ws)) in enumerate(zip(block_cfg, wrefs)):
        affv = aff_ref[0, i][:cout, :]                   # (cout, 8) f32
        b1, gamma, gb = affv[:, 0:1], affv[:, 1:2], affv[:, 2:3]
        # conv1 -> folded BN1 -> ReLU (all in VMEM)
        y = jnp.maximum(conv3x3(h, w1, cin) + b1, 0.0)
        # conv2 -> folded BN2 -> per-batch modulation  gamma*y + (gamma*b2+beta)
        y = conv3x3(y, w2, cout) * gamma + gb
        # shortcut: 1x1 conv + BN, or identity
        if has_sc:
            bs = affv[:, 3:4]
            if cin == 1:
                res = ws[...].astype(jnp.float32) * h    # (cout,1)*(1,M)
            else:
                res = jnp.dot(ws[...], h.astype(MXU_DTYPE),
                              preferred_element_type=jnp.float32)
            res = res + bs
        else:
            res = h
        h = jnp.maximum(y + res, 0.0)                    # (cout, M) f32

    # fused 1x1 output_proj -> single lane-dense (1, M) row
    pw = affv[:, 4:5]                                    # (cout_last, 1)
    pb = affv[0:1, 5:6]                                  # (1, 1)
    o_ref[0] = (jnp.sum(h * pw, axis=0, keepdims=True) + pb).astype(o_ref.dtype)


# ------------------------------ wrappers -------------------------------------

def _build_masks(H, W):
    # (8, M) 0/1 masks, one per non-center tap, same (dh, dw) order as kernel.
    M = H * W
    pos = jnp.arange(M, dtype=jnp.int32)
    row, col = pos // W, pos % W
    rows = []
    for dh in (-1, 0, 1):
        for dw in (-1, 0, 1):
            if dh == 0 and dw == 0:
                continue
            valid = ((row + dh >= 0) & (row + dh < H) &
                     (col + dw >= 0) & (col + dw < W))
            rows.append(valid.astype(jnp.float32))
    return jnp.stack(rows, axis=0)


def _conv_transpose_up2(x, w4, bias):
    # ConvTranspose2d(1, 1, (4,1), (2,1), (1,0)) along the frequency axis.
    #   out[2f]   = w1*x[f]   + w3*x[f-1] + b
    #   out[2f+1] = w0*x[f+1] + w2*x[f]   + b
    # Plain jnp — XLA fuses this; no standalone narrow-lane kernel.
    B, D, T = x.shape
    xpad = jnp.pad(x, ((0, 0), (1, 1), (0, 0)))
    xc, xp, xn = xpad[:, 1:D + 1], xpad[:, 0:D], xpad[:, 2:D + 2]
    even = w4[1] * xc + w4[3] * xp + bias[0]
    odd = w4[0] * xn + w4[2] * xc + bias[0]
    return jnp.stack([even, odd], axis=2).reshape(B, 2 * D, T)   # interleaved rows


def _build_affine(params, cond_vec):
    # Pack every lane-dim-1 affine term into one (B, n_blocks, cmax, 8) operand.
    blocks = params['blocks']
    B = cond_vec.shape[0]
    n = len(blocks)
    cmax = max(p['b1'].shape[0] for p in blocks)
    aff = jnp.zeros((B, n, cmax, 8), jnp.float32)
    for i, p in enumerate(blocks):
        cout = p['b1'].shape[0]
        mod = cond_vec @ p['wm'] + p['bm']               # modulation Conv1d (k=1)
        gamma, beta = mod[:, :cout], mod[:, cout:]
        aff = aff.at[:, i, :cout, 0].set(jnp.broadcast_to(p['b1'], (B, cout)))
        aff = aff.at[:, i, :cout, 1].set(gamma)
        aff = aff.at[:, i, :cout, 2].set(gamma * p['b2'] + beta)
        if 'bs' in p:
            aff = aff.at[:, i, :cout, 3].set(jnp.broadcast_to(p['bs'], (B, cout)))
    c_last = blocks[-1]['b1'].shape[0]
    aff = aff.at[:, n - 1, :c_last, 4].set(jnp.broadcast_to(params['out_w'], (B, c_last)))
    aff = aff.at[:, n - 1, 0, 5].set(jnp.broadcast_to(params['out_b'], (B,)))
    return aff


def _fused_call(params, x_up, aff, masks, H, W):
    B = x_up.shape[0]
    M = H * W
    blocks = params['blocks']
    n = len(blocks)
    cmax = aff.shape[2]

    block_cfg = []
    inputs = [masks, x_up]
    in_specs = [pl.BlockSpec((8, M), lambda b: (0, 0)),
                pl.BlockSpec((1, 1, M), lambda b: (b, 0, 0))]
    for p in blocks:
        cout, k = p['w1'].shape
        cin = k // 9
        has_sc = 'ws' in p
        block_cfg.append((cin, cout, has_sc))
        inputs += [p['w1'], p['w2']]
        in_specs += [pl.BlockSpec(p['w1'].shape, lambda b: (0, 0)),
                     pl.BlockSpec(p['w2'].shape, lambda b: (0, 0))]
        if has_sc:
            inputs.append(p['ws'])
            in_specs.append(pl.BlockSpec(p['ws'].shape, lambda b: (0, 0)))
    inputs.append(aff)
    in_specs.append(pl.BlockSpec((1, n, cmax, 8), lambda b: (b, 0, 0, 0)))

    kern = functools.partial(_fused_kernel, H=H, W=W, block_cfg=tuple(block_cfg))
    return pl.pallas_call(
        kern,
        out_shape=jax.ShapeDtypeStruct((B, 1, M), jnp.float32),
        grid=(B,),
        in_specs=in_specs,
        out_specs=pl.BlockSpec((1, 1, M), lambda b: (b, 0, 0)),
        compiler_params=pltpu.CompilerParams(
            dimension_semantics=("parallel",)),      # >=2 grid steps -> both v7x TCs
    )(*inputs)


# -------------------------- params (folded layout) ---------------------------

def _bn_fold(gamma, beta, mean, var, eps=1e-5):
    scale = gamma / jnp.sqrt(var + eps)
    return scale, beta - mean * scale


def _normal(key, shape, std=0.1):
    return std * jax.random.normal(key, shape, dtype=jnp.float32)


def _init_bn(key, c):
    k1, k2, k3, k4 = jax.random.split(key, 4)
    gamma = 1.0 + _normal(k1, (c,))
    beta = _normal(k2, (c,))
    mean = _normal(k3, (c,))
    var = 1.0 + jnp.abs(_normal(k4, (c,)))
    return _bn_fold(gamma, beta, mean, var)


def init_block(key, cin, cout, e):
    ks = jax.random.split(key, 8)
    W1 = _normal(ks[0], (cout, cin, 3, 3))                 # conv1 (bias=False)
    s1, b1 = _init_bn(ks[1], cout)
    W2 = _normal(ks[2], (cout, cout, 3, 3))                # conv2 (bias=False)
    s2, b2 = _init_bn(ks[3], cout)
    Wm = _normal(ks[4], (2 * cout, e, 1))                  # Conv1d(e, 2*cout, 1)
    bm = _normal(ks[5], (2 * cout,))
    # (cout, 9*cin) layout, column index = tap*cin + c_in; BN scale folded in.
    w1c = (jnp.transpose(W1, (0, 2, 3, 1)) * s1[:, None, None, None]).reshape(cout, 9 * cin)
    w2c = (jnp.transpose(W2, (0, 2, 3, 1)) * s2[:, None, None, None]).reshape(cout, 9 * cout)
    w1_dtype = jnp.float32 if cin == 1 else MXU_DTYPE      # cin==1 path stays on VPU
    p = dict(
        w1=w1c.astype(w1_dtype), b1=b1,
        w2=w2c.astype(MXU_DTYPE), b2=b2,
        wm=jnp.transpose(Wm[:, :, 0], (1, 0)), bm=bm,      # (e, 2*cout), (2*cout,)
    )
    if cin != cout:                                        # shortcut 1x1 conv + BN
        Ws = _normal(ks[6], (cout, cin, 1, 1))
        ss, bs = _init_bn(ks[7], cout)
        p['ws'] = (Ws[:, :, 0, 0] * ss[:, None]).astype(w1_dtype)
        p['bs'] = bs
    return p


def init_upsampler(key, channels_list, total_embed_dim):
    ks = jax.random.split(key, 3 + len(channels_list))
    params = {'up_w': _normal(ks[0], (4,)),                # ConvTranspose2d weight[0,0,:,0]
              'up_b': _normal(ks[1], (1,))}
    blocks = []
    cin = 1
    for i, cout in enumerate(channels_list):
        blocks.append(init_block(ks[2 + i], cin, cout, total_embed_dim))
        cin = cout
    params['blocks'] = blocks
    kz = jax.random.split(ks[-1], 2)
    params['out_w'] = _normal(kz[0], (channels_list[-1],)) # output_proj (1x1, with bias)
    params['out_b'] = _normal(kz[1], (1,))
    return params


# --------------------------------- forward -----------------------------------

def highres_upsampler_forward(params, x, f0, phone, midi, unvoiced,
                              downsample_stride=2):
    # x: (B, T, input_dim); embeddings: (B, T_orig, e_i). Output: (B, T, 2*input_dim)
    B, T, Din = x.shape
    H, W = 2 * Din, T
    M = H * W

    # PyTorch: x.permute(0,2,1).unsqueeze(1) -> (B,1,Din,T); upsample freq by 2.
    x_nch = jnp.transpose(x, (0, 2, 1))                    # (B, Din, T)
    up = _conv_transpose_up2(x_nch, params['up_w'], params['up_b'])   # (B, H, W)
    x_up = up.reshape(B, 1, M)                             # NCHW-flat, lane-dense M

    all_emb = jnp.concatenate([f0, phone, midi, unvoiced], axis=2)    # (B, T_orig, E)
    if downsample_stride > 1:
        # Reference quirk: target_time_dim = x.shape[1] AFTER unsqueeze == 1,
        # i.e. F.interpolate(..., size=1, mode='linear', align_corners=False).
        T0 = all_emb.shape[1]
        src = 0.5 * T0 - 0.5
        i0 = max(int(math.floor(src)), 0)
        i1 = min(i0 + 1, T0 - 1)
        frac = src - math.floor(src)
        cond_vec = (1.0 - frac) * all_emb[:, i0, :] + frac * all_emb[:, i1, :]
    else:
        # TODO(synk): per-time-step modulation (downsample_stride == 1) not implemented.
        raise NotImplementedError("only downsample_stride > 1 (module default) is supported")

    aff = _build_affine(params, cond_vec)                  # packed per-batch affine
    masks = _build_masks(H, W)                             # constant boundary masks
    out = _fused_call(params, x_up, aff, masks, H, W)      # (B, 1, M) f32
    return jnp.transpose(out.reshape(B, H, W), (0, 2, 1))  # (B, T, 2*Din)


# ----------------------------------- main -------------------------------------

if __name__ == "__main__":
    key = jax.random.PRNGKey(0)
    B, T, Din = 2, 16, 16
    channels_list = [8, 16]
    f0_dim, ph_dim, mi_dim, uv_dim = 4, 8, 8, 4
    E = f0_dim + ph_dim + mi_dim + uv_dim
    stride = 2
    T_orig = T * stride

    kp, kx, k1, k2, k3, k4 = jax.random.split(key, 6)
    params = init_upsampler(kp, channels_list, E)
    x = jax.random.normal(kx, (B, T, Din), dtype=jnp.float32)
    f0 = jax.random.normal(k1, (B, T_orig, f0_dim), dtype=jnp.float32)
    phone = jax.random.normal(k2, (B, T_orig, ph_dim), dtype=jnp.float32)
    midi = jax.random.normal(k3, (B, T_orig, mi_dim), dtype=jnp.float32)
    unvoiced = jax.random.normal(k4, (B, T_orig, uv_dim), dtype=jnp.float32)

    fwd = jax.jit(functools.partial(highres_upsampler_forward, downsample_stride=stride))
    out = fwd(params, x, f0, phone, midi, unvoiced)
    jax.block_until_ready(out)
    assert out.shape == (B, T, 2 * Din), out.shape
    assert bool(jnp.all(jnp.isfinite(out))), "non-finite output"
    print("KERNEL_OK")
</pallas_src>

<mosaic_0001>
module attributes {stable_mosaic.version = 11 : i64} {
  func.func @_fused_kernel(%arg0: i32, %arg1: memref<8x512xf32, #tpu.memory_space<vmem>>, %arg2: memref<1x1x512xf32, #tpu.memory_space<vmem>>, %arg3: memref<8x9xf32, #tpu.memory_space<vmem>>, %arg4: memref<8x72xbf16, #tpu.memory_space<vmem>>, %arg5: memref<8x1xf32, #tpu.memory_space<vmem>>, %arg6: memref<16x72xbf16, #tpu.memory_space<vmem>>, %arg7: memref<16x144xbf16, #tpu.memory_space<vmem>>, %arg8: memref<16x8xbf16, #tpu.memory_space<vmem>>, %arg9: memref<1x2x16x8xf32, #tpu.memory_space<vmem>>, %arg10: memref<1x1x512xf32, #tpu.memory_space<vmem>>) attributes {dimension_semantics = [#tpu.dimension_semantics<parallel>], iteration_bounds = array<i64: 2>, scalar_prefetch = 0 : i64, scratch_operands = 0 : i64, tpu.core_type = #tpu.core_type<tc>, window_params = [{pipeline_mode = #tpu.pipeline_mode<synchronous>, transform_indices = @transform_0, window_bounds = array<i64: 8, 512>}, {transform_indices = @transform_1, window_bounds = array<i64: 1, 1, 512>}, {pipeline_mode = #tpu.pipeline_mode<synchronous>, transform_indices = @transform_2, window_bounds = array<i64: 8, 9>}, {pipeline_mode = #tpu.pipeline_mode<synchronous>, transform_indices = @transform_3, window_bounds = array<i64: 8, 72>}, {pipeline_mode = #tpu.pipeline_mode<synchronous>, transform_indices = @transform_4, window_bounds = array<i64: 8, 1>}, {pipeline_mode = #tpu.pipeline_mode<synchronous>, transform_indices = @transform_5, window_bounds = array<i64: 16, 72>}, {pipeline_mode = #tpu.pipeline_mode<synchronous>, transform_indices = @transform_6, window_bounds = array<i64: 16, 144>}, {pipeline_mode = #tpu.pipeline_mode<synchronous>, transform_indices = @transform_7, window_bounds = array<i64: 16, 8>}, {transform_indices = @transform_8, window_bounds = array<i64: 1, 2, 16, 8>}, {transform_indices = @transform_9, window_bounds = array<i64: 1, 1, 512>}]} {
    %c0 = arith.constant 0 : index
    %c0_0 = arith.constant 0 : index
    %0 = vector.load %arg1[%c0, %c0_0] : memref<8x512xf32, #tpu.memory_space<vmem>>, vector<8x512xf32>
    %c0_1 = arith.constant 0 : index
    %c0_2 = arith.constant 0 : index
    %c0_3 = arith.constant 0 : index
    %1 = vector.load %arg2[%c0_1, %c0_2, %c0_3] : memref<1x1x512xf32, #tpu.memory_space<vmem>>, vector<1x1x512xf32>
    %2 = vector.shape_cast %1 : vector<1x1x512xf32> to vector<1x512xf32>
    %c0_4 = arith.constant 0 : index
    %c0_5 = arith.constant 0 : index
    %c0_6 = arith.constant 0 : index
    %c0_7 = arith.constant 0 : index
    %3 = vector.load %arg9[%c0_4, %c0_5, %c0_6, %c0_7] : memref<1x2x16x8xf32, #tpu.memory_space<vmem>>, vector<1x1x16x8xf32>
    %4 = vector.shape_cast %3 : vector<1x1x16x8xf32> to vector<16x8xf32>
    %5 = vector.extract_strided_slice %4 {offsets = [0, 0], sizes = [8, 8], strides = [1, 1]} : vector<16x8xf32> to vector<8x8xf32>
    %6 = vector.extract_strided_slice %5 {offsets = [0, 0], sizes = [8, 1], strides = [1, 1]} : vector<8x8xf32> to vector<8x1xf32>
    %7 = vector.extract_strided_slice %5 {offsets = [0, 1], sizes = [8, 1], strides = [1, 1]} : vector<8x8xf32> to vector<8x1xf32>
    %8 = vector.extract_strided_slice %5 {offsets = [0, 2], sizes = [8, 1], strides = [1, 1]} : vector<8x8xf32> to vector<8x1xf32>
    %c17_i32 = arith.constant 17 : i32
    %9 = tpu.dynamic_rotate %2 by %c17_i32 dim 1 : vector<1x512xf32>, i32 -> vector<1x512xf32>
    %10 = vector.extract_strided_slice %0 {offsets = [0, 0], sizes = [1, 512], strides = [1, 1]} : vector<8x512xf32> to vector<1x512xf32>
    %11 = arith.mulf %9, %10 : vector<1x512xf32>
    %c16_i32 = arith.constant 16 : i32
    %12 = tpu.dynamic_rotate %2 by %c16_i32 dim 1 : vector<1x512xf32>, i32 -> vector<1x512xf32>
    %13 = vector.extract_strided_slice %0 {offsets = [1, 0], sizes = [1, 512], strides = [1, 1]} : vector<8x512xf32> to vector<1x512xf32>
    %14 = arith.mulf %12, %13 : vector<1x512xf32>
    %c15_i32 = arith.constant 15 : i32
    %15 = tpu.dynamic_rotate %2 by %c15_i32 dim 1 : vector<1x512xf32>, i32 -> vector<1x512xf32>
    %16 = vector.extract_strided_slice %0 {offsets = [2, 0], sizes = [1, 512], strides = [1, 1]} : vector<8x512xf32> to vector<1x512xf32>
    %17 = arith.mulf %15, %16 : vector<1x512xf32>
    %c1_i32 = arith.constant 1 : i32
    %18 = tpu.dynamic_rotate %2 by %c1_i32 dim 1 : vector<1x512xf32>, i32 -> vector<1x512xf32>
    %19 = vector.extract_strided_slice %0 {offsets = [3, 0], sizes = [1, 512], strides = [1, 1]} : vector<8x512xf32> to vector<1x512xf32>
    %20 = arith.mulf %18, %19 : vector<1x512xf32>
    %c511_i32 = arith.constant 511 : i32
    %21 = tpu.dynamic_rotate %2 by %c511_i32 dim 1 : vector<1x512xf32>, i32 -> vector<1x512xf32>
    %22 = vector.extract_strided_slice %0 {offsets = [4, 0], sizes = [1, 512], strides = [1, 1]} : vector<8x512xf32> to vector<1x512xf32>
    %23 = arith.mulf %21, %22 : vector<1x512xf32>
    %c497_i32 = arith.constant 497 : i32
    %24 = tpu.dynamic_rotate %2 by %c497_i32 dim 1 : vector<1x512xf32>, i32 -> vector<1x512xf32>
    %25 = vector.extract_strided_slice %0 {offsets = [5, 0], sizes = [1, 512], strides = [1, 1]} : vector<8x512xf32> to vector<1x512xf32>
    %26 = arith.mulf %24, %25 : vector<1x512xf32>
    %c496_i32 = arith.constant 496 : i32
    %27 = tpu.dynamic_rotate %2 by %c496_i32 dim 1 : vector<1x512xf32>, i32 -> vector<1x512xf32>
    %28 = vector.extract_strided_slice %0 {offsets = [6, 0], sizes = [1, 512], strides = [1, 1]} : vector<8x512xf32> to vector<1x512xf32>
    %29 = arith.mulf %27, %28 : vector<1x512xf32>
    %c495_i32 = arith.constant 495 : i32
    %30 = tpu.dynamic_rotate %2 by %c495_i32 dim 1 : vector<1x512xf32>, i32 -> vector<1x512xf32>
    %31 = vector.extract_strided_slice %0 {offsets = [7, 0], sizes = [1, 512], strides = [1, 1]} : vector<8x512xf32> to vector<1x512xf32>
    %32 = arith.mulf %30, %31 : vector<1x512xf32>
    %c0_8 = arith.constant 0 : index
    %c0_9 = arith.constant 0 : index
    %33 = vector.load %arg3[%c0_8, %c0_9] : memref<8x9xf32, #tpu.memory_space<vmem>>, vector<8x9xf32>
    %34 = vector.extract_strided_slice %33 {offsets = [0, 0], sizes = [8, 1], strides = [1, 1]} : vector<8x9xf32> to vector<8x1xf32>
    %35 = vector.broadcast %34 : vector<8x1xf32> to vector<8x512xf32>
    %36 = vector.broadcast %11 : vector<1x512xf32> to vector<8x512xf32>
    %37 = arith.mulf %35, %36 : vector<8x512xf32>
    %38 = vector.extract_strided_slice %33 {offsets = [0, 1], sizes = [8, 1], strides = [1, 1]} : vector<8x9xf32> to vector<8x1xf32>
    %39 = vector.broadcast %38 : vector<8x1xf32> to vector<8x512xf32>
    %40 = vector.broadcast %14 : vector<1x512xf32> to vector<8x512xf32>
    %41 = arith.mulf %39, %40 : vector<8x512xf32>
    %42 = arith.addf %37, %41 : vector<8x512xf32>
    %43 = vector.extract_strided_slice %33 {offsets = [0, 2], sizes = [8, 1], strides = [1, 1]} : vector<8x9xf32> to vector<8x1xf32>
    %44 = vector.broadcast %43 : vector<8x1xf32> to vector<8x512xf32>
    %45 = vector.broadcast %17 : vector<1x512xf32> to vector<8x512xf32>
    %46 = arith.mulf %44, %45 : vector<8x512xf32>
    %47 = arith.addf %42, %46 : vector<8x512xf32>
    %48 = vector.extract_strided_slice %33 {offsets = [0, 3], sizes = [8, 1], strides = [1, 1]} : vector<8x9xf32> to vector<8x1xf32>
    %49 = vector.broadcast %48 : vector<8x1xf32> to vector<8x512xf32>
    %50 = vector.broadcast %20 : vector<1x512xf32> to vector<8x512xf32>
    %51 = arith.mulf %49, %50 : vector<8x512xf32>
    %52 = arith.addf %47, %51 : vector<8x512xf32>
    %53 = vector.extract_strided_slice %33 {offsets = [0, 4], sizes = [8, 1], strides = [1, 1]} : vector<8x9xf32> to vector<8x1xf32>
    %54 = vector.broadcast %53 : vector<8x1xf32> to vector<8x512xf32>
    %55 = vector.broadcast %2 : vector<1x512xf32> to vector<8x512xf32>
    %56 = arith.mulf %54, %55 : vector<8x512xf32>
    %57 = arith.addf %52, %56 : vector<8x512xf32>
    %58 = vector.extract_strided_slice %33 {offsets = [0, 5], sizes = [8, 1], strides = [1, 1]} : vector<8x9xf32> to vector<8x1xf32>
    %59 = vector.broadcast %58 : vector<8x1xf32> to vector<8x512xf32>
    %60 = vector.broadcast %23 : vector<1x512xf32> to vector<8x512xf32>
    %61 = arith.mulf %59, %60 : vector<8x512xf32>
    %62 = arith.addf %57, %61 : vector<8x512xf32>
    %63 = vector.extract_strided_slice %33 {offsets = [0, 6], sizes = [8, 1], strides = [1, 1]} : vector<8x9xf32> to vector<8x1xf32>
    %64 = vector.broadcast %63 : vector<8x1xf32> to vector<8x512xf32>
    %65 = vector.broadcast %26 : vector<1x512xf32> to vector<8x512xf32>
    %66 = arith.mulf %64, %65 : vector<8x512xf32>
    %67 = arith.addf %62, %66 : vector<8x512xf32>
    %68 = vector.extract_strided_slice %33 {offsets = [0, 7], sizes = [8, 1], strides = [1, 1]} : vector<8x9xf32> to vector<8x1xf32>
    %69 = vector.broadcast %68 : vector<8x1xf32> to vector<8x512xf32>
    %70 = vector.broadcast %29 : vector<1x512xf32> to vector<8x512xf32>
    %71 = arith.mulf %69, %70 : vector<8x512xf32>
    %72 = arith.addf %67, %71 : vector<8x512xf32>
    %73 = vector.extract_strided_slice %33 {offsets = [0, 8], sizes = [8, 1], strides = [1, 1]} : vector<8x9xf32> to vector<8x1xf32>
    %74 = vector.broadcast %73 : vector<8x1xf32> to vector<8x512xf32>
    %75 = vector.broadcast %32 : vector<1x512xf32> to vector<8x512xf32>
    %76 = arith.mulf %74, %75 : vector<8x512xf32>
    %77 = arith.addf %72, %76 : vector<8x512xf32>
    %78 = vector.broadcast %6 : vector<8x1xf32> to vector<8x512xf32>
    %79 = arith.addf %77, %78 : vector<8x512xf32>
    %cst = arith.constant 0.000000e+00 : f32
    %80 = vector.broadcast %cst : f32 to vector<8x512xf32>
    %81 = arith.maximumf %79, %80 : vector<8x512xf32>
    %c17_i32_10 = arith.constant 17 : i32
    %82 = tpu.dynamic_rotate %81 by %c17_i32_10 dim 1 : vector<8x512xf32>, i32 -> vector<8x512xf32>
    %83 = vector.extract_strided_slice %0 {offsets = [0, 0], sizes = [1, 512], strides = [1, 1]} : vector<8x512xf32> to vector<1x512xf32>
    %84 = vector.broadcast %83 : vector<1x512xf32> to vector<8x512xf32>
    %85 = arith.mulf %82, %84 : vector<8x512xf32>
    %c16_i32_11 = arith.constant 16 : i32
    %86 = tpu.dynamic_rotate %81 by %c16_i32_11 dim 1 : vector<8x512xf32>, i32 -> vector<8x512xf32>
    %87 = vector.extract_strided_slice %0 {offsets = [1, 0], sizes = [1, 512], strides = [1, 1]} : vector<8x512xf32> to vector<1x512xf32>
    %88 = vector.broadcast %87 : vector<1x512xf32> to vector<8x512xf32>
    %89 = arith.mulf %86, %88 : vector<8x512xf32>
    %c15_i32_12 = arith.constant 15 : i32
    %90 = tpu.dynamic_rotate %81 by %c15_i32_12 dim 1 : vector<8x512xf32>, i32 -> vector<8x512xf32>
    %91 = vector.extract_strided_slice %0 {offsets = [2, 0], sizes = [1, 512], strides = [1, 1]} : vector<8x512xf32> to vector<1x512xf32>
    %92 = vector.broadcast %91 : vector<1x512xf32> to vector<8x512xf32>
    %93 = arith.mulf %90, %92 : vector<8x512xf32>
    %c1_i32_13 = arith.constant 1 : i32
    %94 = tpu.dynamic_rotate %81 by %c1_i32_13 dim 1 : vector<8x512xf32>, i32 -> vector<8x512xf32>
    %95 = vector.extract_strided_slice %0 {offsets = [3, 0], sizes = [1, 512], strides = [1, 1]} : vector<8x512xf32> to vector<1x512xf32>
    %96 = vector.broadcast %95 : vector<1x512xf32> to vector<8x512xf32>
    %97 = arith.mulf %94, %96 : vector<8x512xf32>
    %c511_i32_14 = arith.constant 511 : i32
    %98 = tpu.dynamic_rotate %81 by %c511_i32_14 dim 1 : vector<8x512xf32>, i32 -> vector<8x512xf32>
    %99 = vector.extract_strided_slice %0 {offsets = [4, 0], sizes = [1, 512], strides = [1, 1]} : vector<8x512xf32> to vector<1x512xf32>
    %100 = vector.broadcast %99 : vector<1x512xf32> to vector<8x512xf32>
    %101 = arith.mulf %98, %100 : vector<8x512xf32>
    %c497_i32_15 = arith.constant 497 : i32
    %102 = tpu.dynamic_rotate %81 by %c497_i32_15 dim 1 : vector<8x512xf32>, i32 -> vector<8x512xf32>
    %103 = vector.extract_strided_slice %0 {offsets = [5, 0], sizes = [1, 512], strides = [1, 1]} : vector<8x512xf32> to vector<1x512xf32>
    %104 = vector.broadcast %103 : vector<1x512xf32> to vector<8x512xf32>
    %105 = arith.mulf %102, %104 : vector<8x512xf32>
    %c496_i32_16 = arith.constant 496 : i32
    %106 = tpu.dynamic_rotate %81 by %c496_i32_16 dim 1 : vector<8x512xf32>, i32 -> vector<8x512xf32>
    %107 = vector.extract_strided_slice %0 {offsets = [6, 0], sizes = [1, 512], strides = [1, 1]} : vector<8x512xf32> to vector<1x512xf32>
    %108 = vector.broadcast %107 : vector<1x512xf32> to vector<8x512xf32>
    %109 = arith.mulf %106, %108 : vector<8x512xf32>
    %c495_i32_17 = arith.constant 495 : i32
    %110 = tpu.dynamic_rotate %81 by %c495_i32_17 dim 1 : vector<8x512xf32>, i32 -> vector<8x512xf32>
    %111 = vector.extract_strided_slice %0 {offsets = [7, 0], sizes = [1, 512], strides = [1, 1]} : vector<8x512xf32> to vector<1x512xf32>
    %112 = vector.broadcast %111 : vector<1x512xf32> to vector<8x512xf32>
    %113 = arith.mulf %110, %112 : vector<8x512xf32>
    %114 = tpu.concatenate %85, %89, %93, %97, %81, %101, %105, %109, %113 in 0 : vector<8x512xf32>, vector<8x512xf32>, vector<8x512xf32>, vector<8x512xf32>, vector<8x512xf32>, vector<8x512xf32>, vector<8x512xf32>, vector<8x512xf32>, vector<8x512xf32> -> vector<72x512xf32>
    %115 = arith.truncf %114 : vector<72x512xf32> to vector<72x512xbf16>
    %c0_18 = arith.constant 0 : index
    %c0_19 = arith.constant 0 : index
    %116 = vector.load %arg4[%c0_18, %c0_19] : memref<8x72xbf16, #tpu.memory_space<vmem>>, vector<8x72xbf16>
    %cst_20 = arith.constant dense<0.000000e+00> : vector<8x512xf32>
    %117 = tpu.matmul %116, %115, %cst_20 {dimension_numbers = #tpu.dot_dimension_numbers<[1], [0], [0], [1], [0, 0, 1, 1], [], []>} : vector<8x72xbf16>, vector<72x512xbf16>, vector<8x512xf32> -> vector<8x512xf32>
    %118 = vector.broadcast %7 : vector<8x1xf32> to vector<8x512xf32>
    %119 = arith.mulf %117, %118 : vector<8x512xf32>
    %120 = vector.broadcast %8 : vector<8x1xf32> to vector<8x512xf32>
    %121 = arith.addf %119, %120 : vector<8x512xf32>
    %122 = vector.extract_strided_slice %5 {offsets = [0, 3], sizes = [8, 1], strides = [1, 1]} : vector<8x8xf32> to vector<8x1xf32>
    %c0_21 = arith.constant 0 : index
    %c0_22 = arith.constant 0 : index
    %123 = vector.load %arg5[%c0_21, %c0_22] : memref<8x1xf32, #tpu.memory_space<vmem>>, vector<8x1xf32>
    %124 = vector.broadcast %123 : vector<8x1xf32> to vector<8x512xf32>
    %125 = vector.broadcast %2 : vector<1x512xf32> to vector<8x512xf32>
    %126 = arith.mulf %124, %125 : vector<8x512xf32>
    %127 = vector.broadcast %122 : vector<8x1xf32> to vector<8x512xf32>
    %128 = arith.addf %126, %127 : vector<8x512xf32>
    %129 = arith.addf %121, %128 : vector<8x512xf32>
    %cst_23 = arith.constant 0.000000e+00 : f32
    %130 = vector.broadcast %cst_23 : f32 to vector<8x512xf32>
    %131 = arith.maximumf %129, %130 : vector<8x512xf32>
    %c0_24 = arith.constant 0 : index
    %c1 = arith.constant 1 : index
    %c0_25 = arith.constant 0 : index
    %c0_26 = arith.constant 0 : index
    %132 = vector.load %arg9[%c0_24, %c1, %c0_25, %c0_26] : memref<1x2x16x8xf32, #tpu.memory_space<vmem>>, vector<1x1x16x8xf32>
    %133 = vector.shape_cast %132 : vector<1x1x16x8xf32> to vector<16x8xf32>
    %134 = vector.extract_strided_slice %133 {offsets = [0, 0], sizes = [16, 1], strides = [1, 1]} : vector<16x8xf32> to vector<16x1xf32>
    %135 = vector.extract_strided_slice %133 {offsets = [0, 1], sizes = [16, 1], strides = [1, 1]} : vector<16x8xf32> to vector<16x1xf32>
    %136 = vector.extract_strided_slice %133 {offsets = [0, 2], sizes = [16, 1], strides = [1, 1]} : vector<16x8xf32> to vector<16x1xf32>
    %c17_i32_27 = arith.constant 17 : i32
    %137 = tpu.dynamic_rotate %131 by %c17_i32_27 dim 1 : vector<8x512xf32>, i32 -> vector<8x512xf32>
    %138 = vector.extract_strided_slice %0 {offsets = [0, 0], sizes = [1, 512], strides = [1, 1]} : vector<8x512xf32> to vector<1x512xf32>
    %139 = vector.broadcast %138 : vector<1x512xf32> to vector<8x512xf32>
    %140 = arith.mulf %137, %139 : vector<8x512xf32>
    %c16_i32_28 = arith.constant 16 : i32
    %141 = tpu.dynamic_rotate %131 by %c16_i32_28 dim 1 : vector<8x512xf32>, i32 -> vector<8x512xf32>
    %142 = vector.extract_strided_slice %0 {offsets = [1, 0], sizes = [1, 512], strides = [1, 1]} : vector<8x512xf32> to vector<1x512xf32>
    %143 = vector.broadcast %142 : vector<1x512xf32> to vector<8x512xf32>
    %144 = arith.mulf %141, %143 : vector<8x512xf32>
    %c15_i32_29 = arith.constant 15 : i32
    %145 = tpu.dynamic_rotate %131 by %c15_i32_29 dim 1 : vector<8x512xf32>, i32 -> vector<8x512xf32>
    %146 = vector.extract_strided_slice %0 {offsets = [2, 0], sizes = [1, 512], strides = [1, 1]} : vector<8x512xf32> to vector<1x512xf32>
    %147 = vector.broadcast %146 : vector<1x512xf32> to vector<8x512xf32>
    %148 = arith.mulf %145, %147 : vector<8x512xf32>
    %c1_i32_30 = arith.constant 1 : i32
    %149 = tpu.dynamic_rotate %131 by %c1_i32_30 dim 1 : vector<8x512xf32>, i32 -> vector<8x512xf32>
    %150 = vector.extract_strided_slice %0 {offsets = [3, 0], sizes = [1, 512], strides = [1, 1]} : vector<8x512xf32> to vector<1x512xf32>
    %151 = vector.broadcast %150 : vector<1x512xf32> to vector<8x512xf32>
    %152 = arith.mulf %149, %151 : vector<8x512xf32>
    %c511_i32_31 = arith.constant 511 : i32
    %153 = tpu.dynamic_rotate %131 by %c511_i32_31 dim 1 : vector<8x512xf32>, i32 -> vector<8x512xf32>
    %154 = vector.extract_strided_slice %0 {offsets = [4, 0], sizes = [1, 512], strides = [1, 1]} : vector<8x512xf32> to vector<1x512xf32>
    %155 = vector.broadcast %154 : vector<1x512xf32> to vector<8x512xf32>
    %156 = arith.mulf %153, %155 : vector<8x512xf32>
    %c497_i32_32 = arith.constant 497 : i32
    %157 = tpu.dynamic_rotate %131 by %c497_i32_32 dim 1 : vector<8x512xf32>, i32 -> vector<8x512xf32>
    %158 = vector.extract_strided_slice %0 {offsets = [5, 0], sizes = [1, 512], strides = [1, 1]} : vector<8x512xf32> to vector<1x512xf32>
    %159 = vector.broadcast %158 : vector<1x512xf32> to vector<8x512xf32>
    %160 = arith.mulf %157, %159 : vector<8x512xf32>
    %c496_i32_33 = arith.constant 496 : i32
    %161 = tpu.dynamic_rotate %131 by %c496_i32_33 dim 1 : vector<8x512xf32>, i32 -> vector<8x512xf32>
    %162 = vector.extract_strided_slice %0 {offsets = [6, 0], sizes = [1, 512], strides = [1, 1]} : vector<8x512xf32> to vector<1x512xf32>
    %163 = vector.broadcast %162 : vector<1x512xf32> to vector<8x512xf32>
    %164 = arith.mulf %161, %163 : vector<8x512xf32>
    %c495_i32_34 = arith.constant 495 : i32
    %165 = tpu.dynamic_rotate %131 by %c495_i32_34 dim 1 : vector<8x512xf32>, i32 -> vector<8x512xf32>
    %166 = vector.extract_strided_slice %0 {offsets = [7, 0], sizes = [1, 512], strides = [1, 1]} : vector<8x512xf32> to vector<1x512xf32>
    %167 = vector.broadcast %166 : vector<1x512xf32> to vector<8x512xf32>
    %168 = arith.mulf %165, %167 : vector<8x512xf32>
    %169 = tpu.concatenate %140, %144, %148, %152, %131, %156, %160, %164, %168 in 0 : vector<8x512xf32>, vector<8x512xf32>, vector<8x512xf32>, vector<8x512xf32>, vector<8x512xf32>, vector<8x512xf32>, vector<8x512xf32>, vector<8x512xf32>, vector<8x512xf32> -> vector<72x512xf32>
    %170 = arith.truncf %169 : vector<72x512xf32> to vector<72x512xbf16>
    %c0_35 = arith.constant 0 : index
    %c0_36 = arith.constant 0 : index
    %171 = vector.load %arg6[%c0_35, %c0_36] : memref<16x72xbf16, #tpu.memory_space<vmem>>, vector<16x72xbf16>
    %cst_37 = arith.constant dense<0.000000e+00> : vector<16x512xf32>
    %172 = tpu.matmul %171, %170, %cst_37 {dimension_numbers = #tpu.dot_dimension_numbers<[1], [0], [0], [1], [0, 0, 1, 1], [], []>} : vector<16x72xbf16>, vector<72x512xbf16>, vector<16x512xf32> -> vector<16x512xf32>
    %173 = vector.broadcast %134 : vector<16x1xf32> to vector<16x512xf32>
    %174 = arith.addf %172, %173 : vector<16x512xf32>
    %cst_38 = arith.constant 0.000000e+00 : f32
    %175 = vector.broadcast %cst_38 : f32 to vector<16x512xf32>
    %176 = arith.maximumf %174, %175 : vector<16x512xf32>
    %c17_i32_39 = arith.constant 17 : i32
    %177 = tpu.dynamic_rotate %176 by %c17_i32_39 dim 1 : vector<16x512xf32>, i32 -> vector<16x512xf32>
    %178 = vector.extract_strided_slice %0 {offsets = [0, 0], sizes = [1, 512], strides = [1, 1]} : vector<8x512xf32> to vector<1x512xf32>
    %179 = vector.broadcast %178 : vector<1x512xf32> to vector<16x512xf32>
    %180 = arith.mulf %177, %179 : vector<16x512xf32>
    %c16_i32_40 = arith.constant 16 : i32
    %181 = tpu.dynamic_rotate %176 by %c16_i32_40 dim 1 : vector<16x512xf32>, i32 -> vector<16x512xf32>
    %182 = vector.extract_strided_slice %0 {offsets = [1, 0], sizes = [1, 512], strides = [1, 1]} : vector<8x512xf32> to vector<1x512xf32>
    %183 = vector.broadcast %182 : vector<1x512xf32> to vector<16x512xf32>
    %184 = arith.mulf %181, %183 : vector<16x512xf32>
    %c15_i32_41 = arith.constant 15 : i32
    %185 = tpu.dynamic_rotate %176 by %c15_i32_41 dim 1 : vector<16x512xf32>, i32 -> vector<16x512xf32>
    %186 = vector.extract_strided_slice %0 {offsets = [2, 0], sizes = [1, 512], strides = [1, 1]} : vector<8x512xf32> to vector<1x512xf32>
    %187 = vector.broadcast %186 : vector<1x512xf32> to vector<16x512xf32>
    %188 = arith.mulf %185, %187 : vector<16x512xf32>
    %c1_i32_42 = arith.constant 1 : i32
    %189 = tpu.dynamic_rotate %176 by %c1_i32_42 dim 1 : vector<16x512xf32>, i32 -> vector<16x512xf32>
    %190 = vector.extract_strided_slice %0 {offsets = [3, 0], sizes = [1, 512], strides = [1, 1]} : vector<8x512xf32> to vector<1x512xf32>
    %191 = vector.broadcast %190 : vector<1x512xf32> to vector<16x512xf32>
    %192 = arith.mulf %189, %191 : vector<16x512xf32>
    %c511_i32_43 = arith.constant 511 : i32
    %193 = tpu.dynamic_rotate %176 by %c511_i32_43 dim 1 : vector<16x512xf32>, i32 -> vector<16x512xf32>
    %194 = vector.extract_strided_slice %0 {offsets = [4, 0], sizes = [1, 512], strides = [1, 1]} : vector<8x512xf32> to vector<1x512xf32>
    %195 = vector.broadcast %194 : vector<1x512xf32> to vector<16x512xf32>
    %196 = arith.mulf %193, %195 : vector<16x512xf32>
    %c497_i32_44 = arith.constant 497 : i32
    %197 = tpu.dynamic_rotate %176 by %c497_i32_44 dim 1 : vector<16x512xf32>, i32 -> vector<16x512xf32>
    %198 = vector.extract_strided_slice %0 {offsets = [5, 0], sizes = [1, 512], strides = [1, 1]} : vector<8x512xf32> to vector<1x512xf32>
    %199 = vector.broadcast %198 : vector<1x512xf32> to vector<16x512xf32>
    %200 = arith.mulf %197, %199 : vector<16x512xf32>
    %c496_i32_45 = arith.constant 496 : i32
    %201 = tpu.dynamic_rotate %176 by %c496_i32_45 dim 1 : vector<16x512xf32>, i32 -> vector<16x512xf32>
    %202 = vector.extract_strided_slice %0 {offsets = [6, 0], sizes = [1, 512], strides = [1, 1]} : vector<8x512xf32> to vector<1x512xf32>
    %203 = vector.broadcast %202 : vector<1x512xf32> to vector<16x512xf32>
    %204 = arith.mulf %201, %203 : vector<16x512xf32>
    %c495_i32_46 = arith.constant 495 : i32
    %205 = tpu.dynamic_rotate %176 by %c495_i32_46 dim 1 : vector<16x512xf32>, i32 -> vector<16x512xf32>
    %206 = vector.extract_strided_slice %0 {offsets = [7, 0], sizes = [1, 512], strides = [1, 1]} : vector<8x512xf32> to vector<1x512xf32>
    %207 = vector.broadcast %206 : vector<1x512xf32> to vector<16x512xf32>
    %208 = arith.mulf %205, %207 : vector<16x512xf32>
    %209 = tpu.concatenate %180, %184, %188, %192, %176, %196, %200, %204, %208 in 0 : vector<16x512xf32>, vector<16x512xf32>, vector<16x512xf32>, vector<16x512xf32>, vector<16x512xf32>, vector<16x512xf32>, vector<16x512xf32>, vector<16x512xf32>, vector<16x512xf32> -> vector<144x512xf32>
    %210 = arith.truncf %209 : vector<144x512xf32> to vector<144x512xbf16>
    %c0_47 = arith.constant 0 : index
    %c0_48 = arith.constant 0 : index
    %211 = vector.load %arg7[%c0_47, %c0_48] : memref<16x144xbf16, #tpu.memory_space<vmem>>, vector<16x144xbf16>
    %cst_49 = arith.constant dense<0.000000e+00> : vector<16x512xf32>
    %212 = tpu.matmul %211, %210, %cst_49 {dimension_numbers = #tpu.dot_dimension_numbers<[1], [0], [0], [1], [0, 0, 1, 1], [], []>} : vector<16x144xbf16>, vector<144x512xbf16>, vector<16x512xf32> -> vector<16x512xf32>
    %213 = vector.broadcast %135 : vector<16x1xf32> to vector<16x512xf32>
    %214 = arith.mulf %212, %213 : vector<16x512xf32>
    %215 = vector.broadcast %136 : vector<16x1xf32> to vector<16x512xf32>
    %216 = arith.addf %214, %215 : vector<16x512xf32>
    %217 = vector.extract_strided_slice %133 {offsets = [0, 3], sizes = [16, 1], strides = [1, 1]} : vector<16x8xf32> to vector<16x1xf32>
    %c0_50 = arith.constant 0 : index
    %c0_51 = arith.constant 0 : index
    %218 = vector.load %arg8[%c0_50, %c0_51] : memref<16x8xbf16, #tpu.memory_space<vmem>>, vector<16x8xbf16>
    %219 = arith.truncf %131 : vector<8x512xf32> to vector<8x512xbf16>
    %cst_52 = arith.constant dense<0.000000e+00> : vector<16x512xf32>
    %220 = tpu.matmul %218, %219, %cst_52 {dimension_numbers = #tpu.dot_dimension_numbers<[1], [0], [0], [1], [0, 0, 1, 1], [], []>} : vector<16x8xbf16>, vector<8x512xbf16>, vector<16x512xf32> -> vector<16x512xf32>
    %221 = vector.broadcast %217 : vector<16x1xf32> to vector<16x512xf32>
    %222 = arith.addf %220, %221 : vector<16x512xf32>
    %223 = arith.addf %216, %222 : vector<16x512xf32>
    %cst_53 = arith.constant 0.000000e+00 : f32
    %224 = vector.broadcast %cst_53 : f32 to vector<16x512xf32>
    %225 = arith.maximumf %223, %224 : vector<16x512xf32>
    %226 = vector.extract_strided_slice %133 {offsets = [0, 4], sizes = [16, 1], strides = [1, 1]} : vector<16x8xf32> to vector<16x1xf32>
    %227 = vector.extract_strided_slice %133 {offsets = [0, 5], sizes = [1, 1], strides = [1, 1]} : vector<16x8xf32> to vector<1x1xf32>
    %228 = vector.broadcast %226 : vector<16x1xf32> to vector<16x512xf32>
    %229 = arith.mulf %225, %228 : vector<16x512xf32>
    %cst_54 = arith.constant dense<0.000000e+00> : vector<512xf32>
    %230 = vector.multi_reduction <add>, %229, %cst_54 [0] : vector<16x512xf32> to vector<512xf32>
    %231 = vector.shape_cast %230 : vector<512xf32> to vector<1x512xf32>
    %232 = vector.broadcast %227 : vector<1x1xf32> to vector<1x512xf32>
    %233 = arith.addf %231, %232 : vector<1x512xf32>
    %c0_55 = arith.constant 0 : index
    %c0_56 = arith.constant 0 : index
    %c0_57 = arith.constant 0 : index
    %234 = vector.load %arg10[%c0_55, %c0_56, %c0_57] : memref<1x1x512xf32, #tpu.memory_space<vmem>>, vector<1x1x512xf32>
    %235 = vector.shape_cast %234 : vector<1x1x512xf32> to vector<1x512xf32>
    %236 = vector.shape_cast %233 : vector<1x512xf32> to vector<1x1x512xf32>
    tpu.vector_store %arg10[%c0_55, %c0_56, %c0_57], %236 {strides = array<i32>} : memref<1x1x512xf32, #tpu.memory_space<vmem>>, vector<1x1x512xf32>,
    return
  }
  func.func @transform_0(%arg0: i32) -> (i32, i32) {
    %c0_i32 = arith.constant 0 : i32
    %c0_i32_0 = arith.constant 0 : i32
    %c0_i32_1 = arith.constant 0 : i32
    return %c0_i32, %c0_i32_0 : i32, i32
  }
  func.func @transform_1(%arg0: i32) -> (i32, i32, i32) {
    %c0_i32 = arith.constant 0 : i32
    %c0_i32_0 = arith.constant 0 : i32
    %c0_i32_1 = arith.constant 0 : i32
    return %arg0, %c0_i32, %c0_i32_0 : i32, i32, i32
  }
  func.func @transform_2(%arg0: i32) -> (i32, i32) {
    %c0_i32 = arith.constant 0 : i32
    %c0_i32_0 = arith.constant 0 : i32
    %c0_i32_1 = arith.constant 0 : i32
    return %c0_i32, %c0_i32_0 : i32, i32
  }
  func.func @transform_3(%arg0: i32) -> (i32, i32) {
    %c0_i32 = arith.constant 0 : i32
    %c0_i32_0 = arith.constant 0 : i32
    %c0_i32_1 = arith.constant 0 : i32
    return %c0_i32, %c0_i32_0 : i32, i32
  }
  func.func @transform_4(%arg0: i32) -> (i32, i32) {
    %c0_i32 = arith.constant 0 : i32
    %c0_i32_0 = arith.constant 0 : i32
    %c0_i32_1 = arith.constant 0 : i32
    return %c0_i32, %c0_i32_0 : i32, i32
  }
  func.func @transform_5(%arg0: i32) -> (i32, i32) {
    %c0_i32 = arith.constant 0 : i32
    %c0_i32_0 = arith.constant 0 : i32
    %c0_i32_1 = arith.constant 0 : i32
    return %c0_i32, %c0_i32_0 : i32, i32
  }
  func.func @transform_6(%arg0: i32) -> (i32, i32) {
    %c0_i32 = arith.constant 0 : i32
    %c0_i32_0 = arith.constant 0 : i32
    %c0_i32_1 = arith.constant 0 : i32
    return %c0_i32, %c0_i32_0 : i32, i32
  }
  func.func @transform_7(%arg0: i32) -> (i32, i32) {
    %c0_i32 = arith.constant 0 : i32
    %c0_i32_0 = arith.constant 0 : i32
    %c0_i32_1 = arith.constant 0 : i32
    return %c0_i32, %c0_i32_0 : i32, i32
  }
  func.func @transform_8(%arg0: i32) -> (i32, i32, i32, i32) {
    %c0_i32 = arith.constant 0 : i32
    %c0_i32_0 = arith.constant 0 : i32
    %c0_i32_1 = arith.constant 0 : i32
    %c0_i32_2 = arith.constant 0 : i32
    return %arg0, %c0_i32, %c0_i32_0, %c0_i32_1 : i32, i32, i32, i32
  }
  func.func @transform_9(%arg0: i32) -> (i32, i32, i32) {
    %c0_i32 = arith.constant 0 : i32
    %c0_i32_0 = arith.constant 0 : i32
    %c0_i32_1 = arith.constant 0 : i32
    return %arg0, %c0_i32, %c0_i32_0 : i32, i32, i32
  }
}

</mosaic_0001>

<bundles_post_ra>
// kernel: highres_upsampler_forward.1
= control target key start
LH: loop header
LB: loop body
LE: loop exit
PB: predicated region body
PF: predicated region fallthrough
CT: control target
= control target key end

     0   :  { %s2392_s30 = smov 0   ;;  %s3842_s0 = inlined_call_operand.vmem [shape: f32[8,512], index: 0, kind: input, shape index: {}]   ;;  %s3843_s1 = inlined_call_operand.vmem [shape: f32[2,1,512], index: 1, kind: input, shape index: {}]   ;;  %s3844_s2 = inlined_call_operand.vmem [shape: f32[8,9], index: 2, kind: input, shape index: {}]   ;;  %s3845_s3 = inlined_call_operand.vmem [shape: bf16[8,72], index: 3, kind: input, shape index: {}]   ;;  %s3846_s4 = inlined_call_operand.vmem [shape: f32[8,1], index: 4, kind: input, shape index: {}]   ;;  %s3847_s5 = inlined_call_operand.vmem [shape: bf16[16,72], index: 5, kind: input, shape index: {}]   ;;  %s3848_s6 = inlined_call_operand.vmem [shape: bf16[16,144], index: 6, kind: input, shape index: {}]   ;;  %s3849_s7 = inlined_call_operand.vmem [shape: bf16[16,8], index: 7, kind: input, shape index: {}]   ;;  %s3850_s8 = inlined_call_operand.vmem [shape: f32[2,2,16,8], index: 8, kind: input, shape index: {}]   ;;  %s3851_s9 = inlined_call_operand.vmem [shape: f32[2,1,512], index: 9, kind: output, shape index: {}]  }
   0x1 LB: > { %s2229_s10 = sadd.s32 4294967295, %s2322_s30   ;;  %p2233_p0 = scmp.ge.s32.totalorder %s2322_s30, 1  ;;  %s2322_s30 = sphi %s2392_s30, %s19_s30  }
   0x2   : > { %p296_p1 = scmp.lt.s32.totalorder %s2322_s30, 3 }
   0x4   : > { %p297_p2 = pnand %p2233_p0, %p296_p1 }
   0x6   : > { %300 = sbr.rel (%p297_p2) target bundleno = 1494 (0x5d6), region = 56 }
   0xb   : > { %p335_p3 = scmp.lt.s32.totalorder %s2229_s10, 1  ;;  %v3852_v0 = vlaneseq  ;;  %v3857_v1 = vmov 1   ;;  %v3859_v2 = vmov 0   ;;  %s2326_s15 = smov 17   ;;  %v574_v13 = vld [vmem:[%s3844_s2] sm:$0xff]  ;;  %v3863_v14 = vmov 2  }
   0xc   : > { %2288 = vset.pattern.permute.xlu1 %v3857_v1  ;;  %2287 = vset.pattern.permute.xlu0 %v3859_v2  ;;  %s2327_s16 = smov 16   ;;  %s2328_s19 = smov 15   ;;  %v3861_v15 = vmov 3   ;;  %v3855_v16 = vmov 4   ;;  %v2334_v17 = vmov 6   ;;  %v3853_v18 = vmov 5  }
   0xd   : > { %s3987_s10 = smov (!%p335_p3, %s2229_s10), 1  ;;  %v2405_v3 = vshrl.u32 %v3852_v0, 7  ;;  %1147 = vmatprep.mubr.bf16.mxu0 %v3859_v2  ;;  %1188 = vmatprep.mubr.bf16.mxu1 %v3859_v2  ;;  %s2331_s20 = smov 1   ;;  %v2338_v19 = vmov 7   ;;  %v2340_v20 = vmov 8   ;;  %v2544_v42 = vand.u32 127, %v3852_v0 }
   0xe   : > { %s2234_s11 = sshll.u32 %s3987_s10, 2  ;;  %s2333_s21 = smov 127   ;;  %v2549_v43 = vld [vmem:[%s3842_s0 + $0x8] sm:$0xff]  ;;  %v2554_v44 = vld [vmem:[%s3842_s0] sm:$0xff]  ;;  %v2563_v47 = vld [vmem:[%s3842_s0 + $0x18] sm:$0xff]  ;;  %vm1102_vm8 = vcmask 1043456  }
   0xf   : > { %3907 = vst [vmem:[#allocation2_spill] sm:$0xff] %v2405_v3  ;;  %v2411_v4 = vsub.s32 0, %v2405_v3  ;;  %v2414_v5 = vsub.s32 2, %v2405_v3  ;;  %s338_s14 = scalar_lea.vmem %s3843_s1, %s2234_s11  ;;  %v2422_v6 = vsub.s32 3, %v2405_v3  ;;  %v2425_v7 = vsub.s32 1, %v2405_v3  ;;  %s2336_s22 = smov 113  }
  0x10   : > { %v353_v8 = vld [vmem:[%s338_s14] sm:$0xf]  ;;  %s2337_s23 = smov 112   ;;  %s2339_s24 = smov 111   ;;  %vm386_vm0 = vcmp.lt.s32.totalorder %v2544_v42, 17  ;;  %v2569_v48 = vld [vmem:[%s3842_s0 + $0x10] sm:$0xff] }
  0x11   : > { %v2428_v9 = vrot.slane %v353_v8, %v2414_v5  ;;  %v2431_v10 = vrot.slane %v353_v8, %v2411_v4  ;;  %v2438_v11 = vrot.slane %v353_v8, %v2422_v6  ;;  %v2441_v12 = vrot.slane %v353_v8, %v2425_v7  ;;  %s2260_s25 = sshll.u32 %s3987_s10, 5  ;;  %s347_s17 = scalar_lea.vmem %s3851_s9, %s2234_s11 }
  0x12   : > { %s2514_s28 = scalar_lea.vmem %s3850_s8, %s2260_s25  ;;  %vm403_vm1 = vcmp.lt.s32.totalorder %v2544_v42, 16  ;;  %v413_v49 = vrot.slane %v2549_v43, 1  ;;  %v412_v50 = vrot.slane %v2554_v44, 1  ;;  %v414_v51 = vrot.slane %v2569_v48, 1 }
  0x13   : > { %380 = vrot.lane.b32.xlu1 %v2428_v9, %s2326_s15  ;;  %376 = vrot.lane.b32.xlu0 %v2431_v10, %s2326_s15  ;;  %v2519_v21 = vld [vmem:[%s2514_s28] sm:$0xff]  ;;  %v415_v52 = vrot.slane %v2563_v47, 1  ;;  %vm432_vm2 = vcmp.lt.s32.totalorder %v2544_v42, 15  ;;  %v438_v53 = vrot.slane %v2549_v43, 2  ;;  %v439_v54 = vrot.slane %v2569_v48, 2 }
  0x14   : > { %v437_v55 = vrot.slane %v2554_v44, 2  ;;  %v440_v56 = vrot.slane %v2563_v47, 2  ;;  %vm457_vm3 = vcmp.lt.s32.totalorder %v2544_v42, 1  ;;  %v463_v57 = vrot.slane %v2549_v43, 3 }
  0x15   : > { %v464_v58 = vrot.slane %v2569_v48, 3  ;;  %v462_v59 = vrot.slane %v2554_v44, 3  ;;  %v465_v60 = vrot.slane %v2563_v47, 3  ;;  %vm482_vm4 = vcmp.lt.s32.totalorder %v2544_v42, 127 }
  0x16   : > { %vm507_vm5 = vcmp.lt.s32.totalorder %v2544_v42, 113  ;;  %vm532_vm6 = vcmp.lt.s32.totalorder %v2544_v42, 112  ;;  %vm557_vm7 = vcmp.lt.s32.totalorder %v2544_v42, 111  ;;  %vm1098_vm9 = vcmask 588800   ;;  %v2314_v42 = vld [vmem:[%s3848_s6] ss:$8 sps:$4 sm:$0xff]  }
  0x17   : > { %382 = vrot.lane.b32.xlu1 %v2438_v11, %s2326_s15  ;;  %378 = vrot.lane.b32.xlu0 %v2441_v12, %s2326_s15  ;;  %vm1819_vm10 = vcmask 130048   ;;  %vm1960_vm11 = vcmask 64512  }
  0x1b   : > { %397 = vrot.lane.b32.xlu1 %v2441_v12, %s2327_s16  ;;  %395 = vrot.lane.b32.xlu0 %v2431_v10, %s2327_s16 }
  0x1f   : > { %401 = vrot.lane.b32.xlu1 %v2438_v11, %s2327_s16  ;;  %399 = vrot.lane.b32.xlu0 %v2428_v9, %s2327_s16 }
  0x23   : > { %601 = vperm.xlu1 %2288, %v574_v13   ;;  %577 = vperm.xlu0 %2287, %v574_v13  }
  0x27   : > { %424 = vrot.lane.b32.xlu1 %v2431_v10, %s2328_s19  ;;  %426 = vrot.lane.b32.xlu0 %v2441_v12, %s2328_s19 }
  0x28   : > { %2289 = vset.pattern.permute.xlu1 %v3863_v14  ;;  %2290 = vset.pattern.permute.xlu0 %v3861_v15 }
  0x2b   : > { %428 = vrot.lane.b32.xlu1 %v2428_v9, %s2328_s19  ;;  %430 = vrot.lane.b32.xlu0 %v2438_v11, %s2328_s19 }
  0x2f   : > { %629 = vperm.xlu1 %2289, %v574_v13   ;;  %449 = vrot.lane.b32.xlu0 %v2431_v10, %s2331_s20 }
  0x33   : > { %451 = vrot.lane.b32.xlu1 %v2441_v12, %s2331_s20  ;;  %453 = vrot.lane.b32.xlu0 %v2428_v9, %s2331_s20 }
  0x34   : > { %2291 = vset.pattern.permute.xlu1 %v3855_v16 }
  0x37   : > { %455 = vrot.lane.b32.xlu1 %v2438_v11, %s2331_s20  ;;  %657 = vperm.xlu0 %2290, %v574_v13  }
  0x3b   : > { %685 = vperm.xlu1 %2291, %v574_v13   ;;  %476 = vrot.lane.b32.xlu0 %v2441_v12, %s2333_s21 }
  0x3c   : > { %2293 = vset.pattern.permute.xlu0 %v2334_v17  ;;  %v537_v17 = vrot.slane %v2554_v44, 6 }
  0x3f   : > { %474 = vrot.lane.b32.xlu1 %v2431_v10, %s2333_s21  ;;  %480 = vrot.lane.b32.xlu0 %v2438_v11, %s2333_s21 }
  0x40   : > { %2292 = vset.pattern.permute.xlu1 %v3853_v18 }
  0x43   : > { %478 = vrot.lane.b32.xlu1 %v2428_v9, %s2333_s21  ;;  %499 = vrot.lane.b32.xlu0 %v2431_v10, %s2336_s22 }
  0x47   : > { %697 = vperm.xlu1 %2292, %v574_v13   ;;  %503 = vrot.lane.b32.xlu0 %v2428_v9, %s2336_s22 }
  0x4b   : > { %501 = vrot.lane.b32.xlu1 %v2441_v12, %s2336_s22  ;;  %725 = vperm.xlu0 %2293, %v574_v13  }
  0x4c   : > { %2296 = vset.pattern.permute.xlu1 %v3859_v2 }
  0x4f   : > { %505 = vrot.lane.b32.xlu1 %v2438_v11, %s2336_s22  ;;  %528 = vrot.lane.b32.xlu0 %v2428_v9, %s2337_s23 }
  0x50   : > { %2294 = vset.pattern.permute.xlu0 %v2338_v19 }
  0x53   : > { %524 = vrot.lane.b32.xlu1 %v2431_v10, %s2337_s23  ;;  %753 = vperm.xlu0 %2294, %v574_v13  }
  0x57   : > { %526 = vrot.lane.b32.xlu1 %v2441_v12, %s2337_s23  ;;  %553 = vrot.lane.b32.xlu0 %v2428_v9, %s2339_s24 }
  0x58   : > { %2295 = vset.pattern.permute.xlu0 %v2340_v20 }
  0x5b   : > { %530 = vrot.lane.b32.xlu1 %v2438_v11, %s2337_s23  ;;  %781 = vperm.xlu0 %2295, %v574_v13  }
  0x5f   : > { %549 = vrot.lane.b32.xlu1 %v2431_v10, %s2339_s24  ;;  %2298 = vset.pattern.permute.xlu0 %v3859_v2 }
  0x63   : > { %551 = vrot.lane.b32.xlu1 %v2441_v12, %s2339_s24 }
  0x67   : > { %555 = vrot.lane.b32.xlu1 %v2438_v11, %s2339_s24 }
  0x6b   : > { %810 = vperm.xlu1 %2296, %v2519_v21  }
  0x6f   : > { %2297 = vset.pattern.permute.xlu1 %v3857_v1 }
  0x85   : > { %v381_v22 = vpop.permute.xlu1 %380  ;;  %v377_v23 = vpop.permute.xlu0 %376 }
  0x89   : > { %v383_v24 = vpop.permute.xlu1 %382  ;;  %v379_v25 = vpop.permute.xlu0 %378 }
  0x8a   : > { %v387_v19 = vsel %vm386_vm0, %v381_v22, %v383_v24  ;;  %v390_v20 = vsel %vm386_vm0, %v383_v24, %v377_v23  ;;  %v389_v0 = vsel %vm386_vm0, %v377_v23, %v379_v25  ;;  %v388_v14 = vsel %vm386_vm0, %v379_v25, %v381_v22 }
  0x8b   : > { %v391_v18 = vmul.f32 %v390_v20, %v2554_v44  ;;  %v392_v2 = vmul.f32 %v389_v0, %v2549_v43 }
  0x8d   : > { %v398_v26 = vpop.permute.xlu1 %397  ;;  %v396_v27 = vpop.permute.xlu0 %395 }
  0x8e   : > { %v406_v16 = vsel %vm403_vm1, %v396_v27, %v398_v26 }
  0x8f   : > { %v421_v22 = vmul.f32 %v413_v49, %v406_v16 }
  0x91   : > { %v402_v28 = vpop.permute.xlu1 %401  ;;  %v400_v29 = vpop.permute.xlu0 %399 }
  0x92   : > { %v407_v1 = vsel %vm403_vm1, %v402_v28, %v396_v27  ;;  %v405_v24 = vsel %vm403_vm1, %v398_v26, %v400_v29  ;;  %v394_v27 = vmul.f32 %v387_v19, %v2563_v47  ;;  %v404_v15 = vsel %vm403_vm1, %v400_v29, %v402_v28 }
  0x93   : > { %v420_v25 = vmul.f32 %v412_v50, %v407_v1  ;;  %v422_v23 = vmul.f32 %v414_v51, %v405_v24  ;;  %v393_v28 = vmul.f32 %v388_v14, %v2569_v48  ;;  %v423_v16 = vmul.f32 %v415_v52, %v404_v15 }
  0x94   : > { %v595_v50 = vrot.slane %v394_v27, %v2411_v4  ;;  %v611_v52 = vrot.slane %v421_v22, %v2411_v4 }
  0x95   : > { %v607_v15 = vrot.slane %v420_v25, %v2411_v4  ;;  %v615_v24 = vrot.slane %v422_v23, %v2411_v4  ;;  %v619_v26 = vrot.slane %v423_v16, %v2411_v4 }
  0x9e   : > { %v2523_v30 = vpop.permute.xlu1 %601  ;;  %v2525_v31 = vpop.permute.xlu0 %577 }
  0x9f   : > { %v623_v16 = vmul.f32 %v619_v26, %v2523_v30 }
  0xa2   : > { %v2527_v32 = vpop.permute.xlu1 %424  ;;  %v2529_v33 = vpop.permute.xlu0 %426 }
  0xa3   : > { %v435_v1 = vsel %vm432_vm2, %v2527_v32, %v2529_v33 }
  0xa4   : > { %v446_v13 = vmul.f32 %v438_v53, %v435_v1  ;;  %v599_v1 = vmul.f32 %v595_v50, %v2525_v31 }
  0xa6   : > { %v429_v34 = vpop.permute.xlu1 %428  ;;  %v431_v35 = vpop.permute.xlu0 %430 }
  0xa7   : > { %v434_v20 = vsel %vm432_vm2, %v2529_v33, %v429_v34  ;;  %v433_v19 = vsel %vm432_vm2, %v429_v34, %v431_v35  ;;  %v436_v0 = vsel %vm432_vm2, %v431_v35, %v2527_v32  ;;  %v583_v34 = vrot.slane %v391_v18, %v2411_v4 }
  0xa8   : > { %v587_v35 = vrot.slane %v392_v2, %v2411_v4  ;;  %v447_v32 = vmul.f32 %v439_v54, %v434_v20  ;;  %v445_v33 = vmul.f32 %v437_v55, %v436_v0  ;;  %v448_v51 = vmul.f32 %v440_v56, %v433_v19 }
  0xa9   : > { %v591_v2 = vrot.slane %v393_v28, %v2411_v4  ;;  %v621_v55 = vmul.f32 %v611_v52, %v2523_v30  ;;  %v622_v56 = vmul.f32 %v615_v24, %v2523_v30  ;;  %v596_v53 = vmul.f32 %v583_v34, %v2525_v31 }
  0xaa   : > { %v2531_v36 = vpop.permute.xlu1 %629  ;;  %v2533_v37 = vpop.permute.xlu0 %449  ;;  %v643_v23 = vrot.slane %v447_v32, %v2411_v4  ;;  %v635_v22 = vrot.slane %v445_v33, %v2411_v4  ;;  %v597_v19 = vmul.f32 %v587_v35, %v2525_v31  ;;  %v639_v28 = vrot.slane %v446_v13, %v2411_v4 }
  0xab   : > { %v598_v0 = vmul.f32 %v591_v2, %v2525_v31  ;;  %v540_v13 = vrot.slane %v2563_v47, 6 }
  0xac   : > { %v650_v31 = vmul.f32 %v643_v23, %v2531_v36  ;;  %v625_v32 = vadd.f32 %v621_v55, %v597_v19  ;;  %v565_v55 = vrot.slane %v2563_v47, 7 }
  0xad   : > { %v626_v33 = vadd.f32 %v622_v56, %v598_v0 }
  0xae   : > { %v2535_v38 = vpop.permute.xlu1 %451  ;;  %v2537_v39 = vpop.permute.xlu0 %453 }
  0xaf   : > { %v460_v29 = vsel %vm457_vm3, %v2533_v37, %v2535_v38  ;;  %v459_v14 = vsel %vm457_vm3, %v2535_v38, %v2537_v39  ;;  %v620_v38 = vmul.f32 %v607_v15, %v2523_v30  ;;  %v562_v15 = vrot.slane %v2554_v44, 7 }
  0xb0   : > { %v471_v18 = vmul.f32 %v463_v57, %v460_v29  ;;  %v472_v25 = vmul.f32 %v464_v58, %v459_v14  ;;  %v647_v58 = vrot.slane %v448_v51, %v2411_v4  ;;  %v648_v30 = vmul.f32 %v635_v22, %v2531_v36 }
  0xb1   : > { %v624_v50 = vadd.f32 %v620_v38, %v596_v53  ;;  %v564_v38 = vrot.slane %v2569_v48, 7  ;;  %v654_v53 = vadd.f32 %v650_v31, %v626_v33 }
  0xb2   : > { %v2539_v40 = vpop.permute.xlu1 %455  ;;  %v2541_v41 = vpop.permute.xlu0 %657  ;;  %v671_v29 = vrot.slane %v472_v25, %v2411_v4  ;;  %v651_v26 = vmul.f32 %v647_v58, %v2531_v36  ;;  %v3908_v58 = vrot.slane %v2549_v43, 4 }
  0xb3   : > { %v461_v57 = vsel %vm457_vm3, %v2539_v40, %v2533_v37  ;;  %v458_v20 = vsel %vm457_vm3, %v2537_v39, %v2539_v40  ;;  %v667_v37 = vrot.slane %v471_v18, %v2411_v4  ;;  %v649_v40 = vmul.f32 %v639_v28, %v2531_v36 }
  0xb4   : > { %v470_v34 = vmul.f32 %v462_v59, %v461_v57  ;;  %v473_v35 = vmul.f32 %v465_v60, %v458_v20  ;;  %v563_v59 = vrot.slane %v2549_v43, 7  ;;  %v627_v60 = vadd.f32 %v623_v16, %v599_v1 }
  0xb5   : > { %v677_v51 = vmul.f32 %v667_v37, %v2541_v41  ;;  %v678_v24 = vmul.f32 %v671_v29, %v2541_v41  ;;  %v653_v25 = vadd.f32 %v649_v40, %v625_v32  ;;  %v652_v56 = vadd.f32 %v648_v30, %v624_v50 }
  0xb6   : > { %v2556_v45 = vpop.permute.xlu1 %685  ;;  %v2558_v46 = vpop.permute.xlu0 %476  ;;  %v663_v52 = vrot.slane %v470_v34, %v2411_v4  ;;  %v675_v36 = vrot.slane %v473_v35, %v2411_v4  ;;  %v655_v57 = vadd.f32 %v651_v26, %v627_v60  ;;  %v3909_v40 = vrot.slane %v2554_v44, 4 }
  0xb7   : > { %v681_v22 = vadd.f32 %v677_v51, %v653_v25  ;;  %v682_v16 = vadd.f32 %v678_v24, %v654_v53  ;;  %v688_v1 = vmul.f32 %v2556_v45, %v2431_v10  ;;  %v689_v31 = vmul.f32 %v2556_v45, %v2441_v12 }
  0xb8   : > { %v676_v37 = vmul.f32 %v663_v52, %v2541_v41  ;;  %v679_v34 = vmul.f32 %v675_v36, %v2541_v41  ;;  %v3910_v26 = vrot.slane %v2554_v44, 5  ;;  %v3911_v50 = vrot.slane %v2549_v43, 5 }
  0xb9   : > { %v690_v33 = vmul.f32 %v2556_v45, %v2428_v9  ;;  %v691_v51 = vmul.f32 %v2556_v45, %v2438_v11  ;;  %v3912_v60 = vrot.slane %v2569_v48, 4  ;;  %v3913_v25 = vrot.slane %v2549_v43, 6 }
  0xba   : > { %v2586_v61 = vpop.permute.xlu1 %474  ;;  %v2590_v8 = vpop.permute.xlu0 %480  ;;  %v680_v53 = vadd.f32 %v676_v37, %v652_v56 }
  0xbb   : > { %v485_v23 = vsel %vm482_vm4, %v2586_v61, %v2558_v46 }
  0xbc   : > { %v495_v35 = vmul.f32 %v3909_v40, %v485_v23  ;;  %v683_v23 = vadd.f32 %v679_v34, %v655_v57  ;;  %v3915_v57 = vrot.slane %v2569_v48, 5 }
  0xbe   : > { %v2611_v63 = vpop.permute.xlu1 %478  ;;  %v2620_v62 = vpop.permute.xlu0 %499 }
  0xbf   : > { %v484_v18 = vsel %vm482_vm4, %v2558_v46, %v2611_v63  ;;  %v483_v46 = vsel %vm482_vm4, %v2611_v63, %v2590_v8  ;;  %v486_v63 = vsel %vm482_vm4, %v2590_v8, %v2586_v61 }
  0xc0   : > { %v496_v20 = vmul.f32 %v3908_v58, %v484_v18  ;;  %v497_v52 = vmul.f32 %v3912_v60, %v483_v46  ;;  %v703_v58 = vrot.slane %v495_v35, %v2411_v4 }
  0xc2   : > { %v2641_v49 = vpop.permute.xlu1 %697  ;;  %v2654_v27 = vpop.permute.xlu0 %503  ;;  %v707_v24 = vrot.slane %v496_v20, %v2411_v4  ;;  %v3914_v20 = vrot.slane %v2563_v47, 4  ;;  %v711_v56 = vrot.slane %v497_v52, %v2411_v4 }
  0xc3   : > { %v716_v40 = vmul.f32 %v703_v58, %v2641_v49 }
  0xc4   : > { %v717_v35 = vmul.f32 %v707_v24, %v2641_v49  ;;  %v718_v52 = vmul.f32 %v711_v56, %v2641_v49 }
  0xc6   : > { %v502_v54 = vpop.permute.xlu1 %501  ;;  %v2687_v14 = vpop.permute.xlu0 %725 }
  0xc7   : > { %v509_v19 = vsel %vm507_vm5, %v502_v54, %v2654_v27  ;;  %v510_v0 = vsel %vm507_vm5, %v2620_v62, %v502_v54 }
  0xc8   : > { %v520_v41 = vmul.f32 %v3910_v26, %v510_v0  ;;  %v521_v32 = vmul.f32 %v3911_v50, %v509_v19  ;;  %v498_v19 = vmul.f32 %v3914_v20, %v486_v63  ;;  %v694_v63 = vadd.f32 %v690_v33, %v682_v16 }
  0xc9   : > { %v695_v50 = vadd.f32 %v691_v51, %v683_v23 }
  0xca   : > { %v506_v39 = vpop.permute.xlu1 %505  ;;  %v529_v28 = vpop.permute.xlu0 %528  ;;  %v735_v46 = vrot.slane %v521_v32, %v2411_v4 }
  0xcb   : > { %v508_v61 = vsel %vm507_vm5, %v2654_v27, %v506_v39  ;;  %v511_v8 = vsel %vm507_vm5, %v506_v39, %v2620_v62  ;;  %v731_v27 = vrot.slane %v520_v41, %v2411_v4  ;;  %v693_v39 = vadd.f32 %v689_v31, %v681_v22 }
  0xcc   : > { %v522_v37 = vmul.f32 %v3915_v57, %v508_v61  ;;  %v3917_v22 = vrot.slane %v2569_v48, 6  ;;  %v692_v41 = vadd.f32 %v688_v1, %v680_v53  ;;  %v745_v60 = vmul.f32 %v735_v46, %v2687_v14 }
  0xcd   : > { %v744_v32 = vmul.f32 %v731_v27, %v2687_v14 }
  0xce   : > { %v525_v2 = vpop.permute.xlu1 %524  ;;  %v754_v0 = vpop.permute.xlu0 %753  ;;  %v739_v16 = vrot.slane %v522_v37, %v2411_v4 }
  0xd0   : > { %v746_v46 = vmul.f32 %v739_v16, %v2687_v14 }
  0xd2   : > { %v527_v29 = vpop.permute.xlu1 %526  ;;  %v554_v61 = vpop.permute.xlu0 %553 }
  0xd3   : > { %v534_v54 = vsel %vm532_vm6, %v527_v29, %v529_v28  ;;  %v535_v30 = vsel %vm532_vm6, %v525_v2, %v527_v29  ;;  %v3916_v29 = vrot.slane %v2563_v47, 5 }
  0xd4   : > { %v545_v18 = vmul.f32 %v537_v17, %v535_v30  ;;  %v546_v36 = vmul.f32 %v3913_v25, %v534_v54 }
  0xd5   : > { %v523_v34 = vmul.f32 %v3916_v29, %v511_v8  ;;  %v720_v8 = vadd.f32 %v716_v40, %v692_v41 }
  0xd6   : > { %v531_v45 = vpop.permute.xlu1 %530  ;;  %v759_v54 = vrot.slane %v545_v18, %v2411_v4  ;;  %v721_v18 = vadd.f32 %v717_v35, %v693_v39 }
  0xd7   : > { %v533_v62 = vsel %vm532_vm6, %v529_v28, %v531_v45  ;;  %v536_v17 = vsel %vm532_vm6, %v531_v45, %v525_v2  ;;  %v763_v28 = vrot.slane %v546_v36, %v2411_v4  ;;  %v715_v2 = vrot.slane %v498_v19, %v2411_v4 }
  0xd8   : > { %v547_v31 = vmul.f32 %v3917_v22, %v533_v62  ;;  %v548_v26 = vmul.f32 %v540_v13, %v536_v17  ;;  %v743_v33 = vrot.slane %v523_v34, %v2411_v4  ;;  %v772_v25 = vmul.f32 %v759_v54, %v754_v0  ;;  %v782_v17 = vpop.permute.xlu0 %781 }
  0xd9   : > { %v719_v24 = vmul.f32 %v715_v2, %v2641_v49  ;;  %v773_v36 = vmul.f32 %v763_v28, %v754_v0  ;;  %v748_v53 = vadd.f32 %v744_v32, %v720_v8  ;;  %v749_v23 = vadd.f32 %v745_v60, %v721_v18 }
  0xda   : > { %v550_v30 = vpop.permute.xlu1 %549  ;;  %v767_v1 = vrot.slane %v547_v31, %v2411_v4  ;;  %v771_v51 = vrot.slane %v548_v26, %v2411_v4  ;;  %v722_v19 = vadd.f32 %v718_v52, %v694_v63  ;;  %v747_v62 = vmul.f32 %v743_v33, %v2687_v14 }
  0xdb   : > { %v723_v27 = vadd.f32 %v719_v24, %v695_v50  ;;  %v776_v39 = vadd.f32 %v772_v25, %v748_v53  ;;  %v777_v56 = vadd.f32 %v773_v36, %v749_v23  ;;  %v1213_v36 = vld [vmem:[%s3846_s4] sm:$0xff] }
  0xdc   : > { %v774_v34 = vmul.f32 %v767_v1, %v754_v0  ;;  %v775_v40 = vmul.f32 %v771_v51, %v754_v0  ;;  %v750_v63 = vadd.f32 %v746_v46, %v722_v19  ;;  %v3919_v1 = vmov 3  }
  0xdd   : > { %v751_v2 = vadd.f32 %v747_v62, %v723_v27  ;;  %v3920_v51 = vmov 0  }
  0xde   : > { %v552_v13 = vpop.permute.xlu1 %551  ;;  %v778_v50 = vadd.f32 %v774_v34, %v750_v63 }
  0xdf   : > { %v559_v45 = vsel %vm557_vm7, %v552_v13, %v554_v61  ;;  %v560_v49 = vsel %vm557_vm7, %v550_v30, %v552_v13  ;;  %v779_v32 = vadd.f32 %v775_v40, %v751_v2  ;;  %v3918_v13 = vmov 2  }
  0xe0   : > { %v570_v58 = vmul.f32 %v562_v15, %v560_v49  ;;  %v571_v20 = vmul.f32 %v563_v59, %v559_v45  ;;  %v1059_v45 = vsub.s32 7, %v2405_v3 }
  0xe2   : > { %v787_v57 = vrot.slane %v570_v58, %v2411_v4  ;;  %v791_v37 = vrot.slane %v571_v20, %v2411_v4  ;;  %v556_v29 = vpop.permute.xlu1 %555  ;;  %v2895_v49 = vrot.slane %v2554_v44, %v1059_v45  ;;  %v2900_v20 = vrot.slane %v2549_v43, %v1059_v45 }
  0xe3   : > { %v558_v15 = vsel %vm557_vm7, %v554_v61, %v556_v29  ;;  %v561_v59 = vsel %vm557_vm7, %v556_v29, %v550_v30  ;;  %v2903_v19 = vrot.slane %v2563_v47, %v1059_v45  ;;  %v2907_v27 = vrot.slane %v2569_v48, %v1059_v45 }
  0xe4   : > { %v572_v35 = vmul.f32 %v564_v38, %v558_v15  ;;  %v573_v14 = vmul.f32 %v565_v55, %v561_v59  ;;  %v800_v54 = vmul.f32 %v787_v57, %v782_v17  ;;  %v801_v28 = vmul.f32 %v791_v37, %v782_v17  ;;  %3921 = vst [vmem:[#allocation3_spill] sm:$0xff] %v2895_v49 }
  0xe5   : > { %3922 = vst [vmem:[#allocation4_spill] sm:$0xff] %v2900_v20  ;;  %3923 = vst [vmem:[#allocation5_spill] sm:$0xff] %v2903_v19 }
  0xe6   : > { %v795_v22 = vrot.slane %v572_v35, %v2411_v4  ;;  %v799_v0 = vrot.slane %v573_v14, %v2411_v4  ;;  %v811_v31 = vpop.permute.xlu1 %810  ;;  %v804_v26 = vadd.f32 %v800_v54, %v776_v39  ;;  %v805_v41 = vadd.f32 %v801_v28, %v777_v56  ;;  %3924 = vst [vmem:[#allocation6_spill] sm:$0xff] %v2907_v27 }
  0xe8   : > { %v802_v30 = vmul.f32 %v795_v22, %v782_v17  ;;  %v803_v60 = vmul.f32 %v799_v0, %v782_v17  ;;  %v813_v52 = vadd.f32 %v811_v31, %v804_v26  ;;  %v814_v38 = vadd.f32 %v811_v31, %v805_v41 }
  0xe9   : > { %v1027_v22 = vsub.s32 6, %v2405_v3  ;;  %v995_v0 = vsub.s32 5, %v2405_v3 }
  0xea   : > { %v806_v24 = vadd.f32 %v802_v30, %v778_v50  ;;  %v807_v16 = vadd.f32 %v803_v60, %v779_v32  ;;  %v2812_v55 = vmax.f32 %v813_v52, 0.0  ;;  %v2814_v33 = vmax.f32 %v814_v38, 0.0 }
  0xeb   : > { %v2928_v26 = vrot.slane %v2549_v43, %v995_v0  ;;  %v2933_v30 = vrot.slane %v2569_v48, %v995_v0  ;;  %v2938_v52 = vrot.slane %v2554_v44, %v1027_v22 }
  0xec   : > { %v815_v61 = vadd.f32 %v811_v31, %v806_v24  ;;  %v816_v8 = vadd.f32 %v811_v31, %v807_v16  ;;  %1047 = vrot.lane.b32.xlu0 %v2814_v33, %s2339_s24  ;;  %1045 = vrot.lane.b32.xlu1 %v2812_v55, %s2339_s24  ;;  %v2925_v31 = vrot.slane %v2563_v47, %v995_v0 }
  0xed   : > { %v2943_v24 = vrot.slane %v2563_v47, %v1027_v22  ;;  %v2946_v16 = vrot.slane %v2549_v43, %v1027_v22 }
  0xee   : > { %v2820_v18 = vmax.f32 %v815_v61, 0.0  ;;  %v2822_v25 = vmax.f32 %v816_v8, 0.0  ;;  %v2949_v61 = vrot.slane %v2569_v48, %v1027_v22  ;;  %v2952_v8 = vrot.slane %v2554_v44, %v995_v0 }
  0xf0   : > { %1051 = vrot.lane.b32.xlu0 %v2822_v25, %s2339_s24  ;;  %1049 = vrot.lane.b32.xlu1 %v2820_v18, %s2339_s24 }
  0xf4   : > { %983 = vrot.lane.b32.xlu0 %v2814_v33, %s2336_s22  ;;  %981 = vrot.lane.b32.xlu1 %v2812_v55, %s2336_s22 }
  0xf8   : > { %987 = vrot.lane.b32.xlu0 %v2822_v25, %s2336_s22  ;;  %985 = vrot.lane.b32.xlu1 %v2820_v18, %s2336_s22 }
  0xfc   : > { %1015 = vrot.lane.b32.xlu0 %v2814_v33, %s2337_s23  ;;  %1013 = vrot.lane.b32.xlu1 %v2812_v55, %s2337_s23 }
 0x100   : > { %1019 = vrot.lane.b32.xlu0 %v2822_v25, %s2337_s23  ;;  %1017 = vrot.lane.b32.xlu1 %v2820_v18, %s2337_s23 }
 0x104   : > { %951 = vrot.lane.b32.xlu0 %v2814_v33, %s2333_s21  ;;  %949 = vrot.lane.b32.xlu1 %v2812_v55, %s2333_s21 }
 0x108   : > { %955 = vrot.lane.b32.xlu0 %v2822_v25, %s2333_s21  ;;  %953 = vrot.lane.b32.xlu1 %v2820_v18, %s2333_s21 }
 0x10c   : > { %887 = vrot.lane.b32.xlu0 %v2814_v33, %s2328_s19  ;;  %885 = vrot.lane.b32.xlu1 %v2812_v55, %s2328_s19 }
 0x110   : > { %891 = vrot.lane.b32.xlu0 %v2822_v25, %s2328_s19  ;;  %889 = vrot.lane.b32.xlu1 %v2820_v18, %s2328_s19 }
 0x114   : > { %919 = vrot.lane.b32.xlu0 %v2814_v33, %s2331_s20  ;;  %917 = vrot.lane.b32.xlu1 %v2812_v55, %s2331_s20 }
 0x118   : > { %923 = vrot.lane.b32.xlu0 %v2822_v25, %s2331_s20  ;;  %921 = vrot.lane.b32.xlu1 %v2820_v18, %s2331_s20 }
 0x11c   : > { %823 = vrot.lane.b32.xlu0 %v2814_v33, %s2326_s15  ;;  %821 = vrot.lane.b32.xlu1 %v2812_v55, %s2326_s15 }
 0x120   : > { %827 = vrot.lane.b32.xlu0 %v2822_v25, %s2326_s15  ;;  %825 = vrot.lane.b32.xlu1 %v2820_v18, %s2326_s15 }
 0x124   : > { %855 = vrot.lane.b32.xlu0 %v2814_v33, %s2327_s16  ;;  %853 = vrot.lane.b32.xlu1 %v2812_v55, %s2327_s16 }
 0x128   : > { %859 = vrot.lane.b32.xlu0 %v2822_v25, %s2327_s16  ;;  %857 = vrot.lane.b32.xlu1 %v2820_v18, %s2327_s16 }
 0x12c   : > { %1198 = vperm.xlu1 %2297, %v2519_v21   ;;  %1216 = vperm.xlu0 %2298, %v1213_v36  }
 0x130   : > { %2299 = vset.pattern.permute.xlu1 %v3918_v13 }
 0x131   : > { %1206 = vperm.xlu1 %2299, %v2519_v21  }
 0x135   : > { %2300 = vset.pattern.permute.xlu1 %v3919_v1 }
 0x136   : > { %1224 = vperm.xlu1 %2300, %v2519_v21  }
 0x13a   : > { %2301 = vset.pattern.permute.xlu1 %v3920_v51 }
 0x15e   : > { %v1048_v53 = vpop.permute.xlu0 %1047  ;;  %v1046_v23 = vpop.permute.xlu1 %1045 }
 0x15f   : > { %v1055_v58 = vsel %vm557_vm7, %v1046_v23, %v1048_v53 }
 0x160   : > { %v1073_v21 = vmul.f32 %v2895_v49, %v1055_v58 }
 0x162   : > { %v1052_v46 = vpop.permute.xlu0 %1051  ;;  %v1050_v62 = vpop.permute.xlu1 %1049  ;;  %v1093_v29 = vpack.c.bf16 %v1073_v21, %v1073_v21 }
 0x163   : > { %v1053_v17 = vsel %vm557_vm7, %v1050_v62, %v1052_v46  ;;  %v1054_v39 = vsel %vm557_vm7, %v1048_v53, %v1050_v62  ;;  %v1056_v56 = vsel %vm557_vm7, %v1052_v46, %v1046_v23  ;;  %v963_v46 = vsub.s32 4, %v2405_v3 }
 0x164   : > { %v1074_v57 = vmul.f32 %v2900_v20, %v1054_v39  ;;  %v1076_v37 = vmul.f32 %v2903_v19, %v1056_v56  ;;  %v1075_v34 = vmul.f32 %v2907_v27, %v1053_v17  ;;  %v1104_v54 = vsel %vm1102_vm8, %v1093_v29, 0 }
 0x165   : > { %v2982_v0 = vrot.slane %v2549_v43, %v963_v46 }
 0x166   : > { %v984_v40 = vpop.permute.xlu0 %983  ;;  %v982_v15 = vpop.permute.xlu1 %981  ;;  %v1094_v59 = vpack.c.bf16 %v1074_v57, %v1074_v57  ;;  %v1096_v35 = vpack.c.bf16 %v1076_v37, %v1076_v37  ;;  %v1095_v14 = vpack.c.bf16 %v1075_v34, %v1075_v34 }
 0x167   : > { %v991_v45 = vsel %vm507_vm5, %v982_v15, %v984_v40 }
 0x168   : > { %2238 = vmatprep.subr.msk.bf16.mxu0 %vm1102_vm8, %v1094_v59  ;;  %2240 = vmatprep.subr.msk.bf16.mxu1 %vm1102_vm8, %v1096_v35  ;;  %v1110_v28 = vsel %vm1102_vm8, %v1095_v14, 0 }
 0x169   : > { %1122 = vmatpush1.bf16.msra.mxu0 %v1104_v54  ;;  %1163 = vmatpush1.bf16.msra.mxu1 %v1110_v28  ;;  %v2974_v28 = vrot.slane %v2554_v44, %v963_v46 }
 0x16a   : > { %v988_v63 = vpop.permute.xlu0 %987  ;;  %v986_v2 = vpop.permute.xlu1 %985 }
 0x16b   : > { %v992_v32 = vsel %vm507_vm5, %v988_v63, %v982_v15  ;;  %v990_v60 = vsel %vm507_vm5, %v984_v40, %v986_v2  ;;  %v989_v36 = vsel %vm507_vm5, %v986_v2, %v988_v63  ;;  %v1009_v40 = vmul.f32 %v2952_v8, %v991_v45 }
 0x16c   : > { %v1012_v53 = vmul.f32 %v2925_v31, %v992_v32  ;;  %v1010_v23 = vmul.f32 %v2928_v26, %v990_v60  ;;  %v1011_v57 = vmul.f32 %v2933_v30, %v989_v36  ;;  %v2977_v2 = vrot.slane %v2563_v47, %v963_v46 }
 0x16e   : > { %v1016_v41 = vpop.permute.xlu0 %1015  ;;  %v1014_v50 = vpop.permute.xlu1 %1013 }
 0x16f   : > { %v1023_v38 = vsel %vm532_vm6, %v1014_v50, %v1016_v41 }
 0x170   : > { %v1041_v62 = vmul.f32 %v2938_v52, %v1023_v38 }
 0x172   : > { %v1020_v58 = vpop.permute.xlu0 %1019  ;;  %v1018_v21 = vpop.permute.xlu1 %1017  ;;  %v1089_v63 = vpack.c.bf16 %v1041_v62, %v1009_v40 }
 0x173   : > { %v1024_v17 = vsel %vm532_vm6, %v1020_v58, %v1014_v50  ;;  %v1021_v39 = vsel %vm532_vm6, %v1018_v21, %v1020_v58  ;;  %v1022_v56 = vsel %vm532_vm6, %v1016_v41, %v1018_v21  ;;  %v2985_v41 = vrot.slane %v2569_v48, %v963_v46 }
 0x174   : > { %v1044_v37 = vmul.f32 %v2943_v24, %v1024_v17  ;;  %v1042_v29 = vmul.f32 %v2946_v16, %v1022_v56  ;;  %v1043_v34 = vmul.f32 %v2949_v61, %v1021_v39 }
 0x176   : > { %v952_v15 = vpop.permute.xlu0 %951  ;;  %v950_v59 = vpop.permute.xlu1 %949  ;;  %v1090_v35 = vpack.c.bf16 %v1042_v29, %v1010_v23  ;;  %v1092_v14 = vpack.c.bf16 %v1044_v37, %v1012_v53  ;;  %v1091_v54 = vpack.c.bf16 %v1043_v34, %v1011_v57  ;;  %v3003_v29 = vrot.slane %v2549_v43, %v2414_v5 }
 0x177   : > { %v959_v22 = vsel %vm482_vm4, %v950_v59, %v952_v15  ;;  %v3007_v34 = vrot.slane %v2549_v43, %v2422_v6 }
 0x178   : > { %1123 = vmatprep.subr.bf16.mxu0 %v1090_v35  ;;  %1164 = vmatprep.subr.bf16.mxu1 %v1092_v14  ;;  %v977_v60 = vmul.f32 %v2974_v28, %v959_v22  ;;  %v3029_v14 = vrot.slane %v2554_v44, %v2422_v6 }
 0x179   : > { %1124 = vmatpush1.bf16.msra.mxu0 %v1089_v63  ;;  %1165 = vmatpush1.bf16.msra.mxu1 %v1091_v54  ;;  %v3033_v54 = vrot.slane %v2569_v48, %v2422_v6 }
 0x17a   : > { %v956_v50 = vpop.permute.xlu0 %955  ;;  %v954_v32 = vpop.permute.xlu1 %953  ;;  %v1085_v56 = vpack.c.bf16 %v977_v60, %v2812_v55  ;;  %v3013_v55 = vrot.slane %v2554_v44, %v2414_v5 }
 0x17b   : > { %v960_v38 = vsel %vm482_vm4, %v956_v50, %v950_v59  ;;  %v957_v36 = vsel %vm482_vm4, %v954_v32, %v956_v50  ;;  %v958_v45 = vsel %vm482_vm4, %v952_v15, %v954_v32  ;;  %v3041_v50 = vrot.slane %v2563_v47, %v2422_v6 }
 0x17c   : > { %v980_v53 = vmul.f32 %v2977_v2, %v960_v38  ;;  %v978_v23 = vmul.f32 %v2982_v0, %v958_v45  ;;  %v979_v58 = vmul.f32 %v2985_v41, %v957_v36 }
 0x17e   : > { %v888_v21 = vpop.permute.xlu0 %887  ;;  %v886_v46 = vpop.permute.xlu1 %885  ;;  %v1086_v62 = vpack.c.bf16 %v978_v23, %v2814_v33  ;;  %v1088_v17 = vpack.c.bf16 %v980_v53, %v2822_v25  ;;  %v1087_v39 = vpack.c.bf16 %v979_v58, %v2820_v18  ;;  %v3017_v18 = vrot.slane %v2569_v48, %v2414_v5 }
 0x17f   : > { %v895_v33 = vsel %vm432_vm2, %v886_v46, %v888_v21  ;;  %v3021_v25 = vrot.slane %v2563_v47, %v2414_v5 }
 0x180   : > { %1125 = vmatprep.subr.bf16.mxu0 %v1086_v62  ;;  %1166 = vmatprep.subr.bf16.mxu1 %v1088_v17  ;;  %v914_v63 = vmul.f32 %v3003_v29, %v895_v33 }
 0x181   : > { %1126 = vmatpush1.bf16.msra.mxu0 %v1085_v56  ;;  %1167 = vmatpush1.bf16.msra.mxu1 %v1087_v39 }
 0x182   : > { %v892_v57 = vpop.permute.xlu0 %891  ;;  %v890_v37 = vpop.permute.xlu1 %889 }
 0x183   : > { %v896_v59 = vsel %vm432_vm2, %v892_v57, %v886_v46  ;;  %v894_v5 = vsel %vm432_vm2, %v888_v21, %v890_v37  ;;  %v893_v32 = vsel %vm432_vm2, %v890_v37, %v892_v57 }
 0x184   : > { %v913_v60 = vmul.f32 %v3013_v55, %v896_v59  ;;  %v915_v53 = vmul.f32 %v3017_v18, %v894_v5  ;;  %v916_v21 = vmul.f32 %v3021_v25, %v893_v32  ;;  %v3069_v5 = vrot.slane %v2554_v44, %v2411_v4 }
 0x185   : > { %v3077_v32 = vrot.slane %v2563_v47, %v2411_v4 }
 0x186   : > { %v920_v40 = vpop.permute.xlu0 %919  ;;  %v918_v15 = vpop.permute.xlu1 %917  ;;  %3927 = vst [vmem:[#allocation9_spill] sm:$0xff] %v3069_v5 }
 0x187   : > { %v927_v35 = vsel %vm457_vm3, %v918_v15, %v920_v40  ;;  %3929 = vst [vmem:[#allocation11_spill] sm:$0xff] %v3077_v32 }
 0x188   : > { %v946_v22 = vmul.f32 %v3007_v34, %v927_v35  ;;  %v3063_v35 = vrot.slane %v2549_v43, %v2425_v7 }
 0x18a   : > { %v924_v38 = vpop.permute.xlu0 %923  ;;  %v922_v36 = vpop.permute.xlu1 %921  ;;  %v1082_v45 = vpack.c.bf16 %v946_v22, %v914_v63  ;;  %3926 = vst [vmem:[#allocation8_spill] sm:$0xff] %v3063_v35  ;;  %v3073_v22 = vrot.slane %v2569_v48, %v2411_v4 }
 0x18b   : > { %v928_v23 = vsel %vm457_vm3, %v924_v38, %v918_v15  ;;  %v925_v58 = vsel %vm457_vm3, %v922_v36, %v924_v38  ;;  %v926_v6 = vsel %vm457_vm3, %v920_v40, %v922_v36  ;;  %v3059_v40 = vrot.slane %v2549_v43, %v2411_v4 }
 0x18c   : > { %v945_v46 = vmul.f32 %v3029_v14, %v928_v23  ;;  %v947_v62 = vmul.f32 %v3033_v54, %v926_v6  ;;  %v948_v17 = vmul.f32 %v3041_v50, %v925_v58  ;;  %1127 = vmatprep.subr.bf16.mxu0 %v1082_v45  ;;  %3928 = vst [vmem:[#allocation10_spill] sm:$0xff] %v3073_v22 }
 0x18d   : > { %3925 = vst [vmem:[#allocation7_spill] sm:$0xff] %v3059_v40  ;;  %v3085_v45 = vrot.slane %v2554_v44, %v2425_v7  ;;  %v3097_v6 = vrot.slane %v2563_v47, %v2425_v7 }
 0x18e   : > { %v824_v39 = vpop.permute.xlu0 %823  ;;  %v822_v56 = vpop.permute.xlu1 %821  ;;  %v1081_v57 = vpack.c.bf16 %v945_v46, %v913_v60  ;;  %v1084_v37 = vpack.c.bf16 %v948_v17, %v916_v21  ;;  %v1083_v33 = vpack.c.bf16 %v947_v62, %v915_v53  ;;  %v3089_v53 = vrot.slane %v2569_v48, %v2425_v7 }
 0x18f   : > { %v831_v63 = vsel %vm386_vm0, %v822_v56, %v824_v39  ;;  %3930 = vst [vmem:[#allocation12_spill] sm:$0xff] %v3085_v45  ;;  %3932 = vst [vmem:[#allocation14_spill] sm:$0xff] %v3097_v6 }
 0x190   : > { %1128 = vmatpush1.bf16.msra.mxu0 %v1081_v57  ;;  %1168 = vmatprep.subr.bf16.mxu1 %v1084_v37  ;;  %3931 = vst [vmem:[#allocation13_spill] sm:$0xff] %v3089_v53  ;;  %v850_v23 = vmul.f32 %v3059_v40, %v831_v63 }
 0x191   : > { %1169 = vmatpush1.bf16.msra.mxu1 %v1083_v33 }
 0x192   : > { %v828_v15 = vpop.permute.xlu0 %827  ;;  %v826_v59 = vpop.permute.xlu1 %825 }
 0x193   : > { %v832_v43 = vsel %vm386_vm0, %v828_v15, %v822_v56  ;;  %v830_v4 = vsel %vm386_vm0, %v824_v39, %v826_v59  ;;  %v829_v21 = vsel %vm386_vm0, %v826_v59, %v828_v15 }
 0x194   : > { %v849_v44 = vmul.f32 %v3069_v5, %v832_v43  ;;  %v851_v17 = vmul.f32 %v3073_v22, %v830_v4  ;;  %v852_v47 = vmul.f32 %v3077_v32, %v829_v21 }
 0x196   : > { %v856_v60 = vpop.permute.xlu0 %855  ;;  %v854_v38 = vpop.permute.xlu1 %853 }
 0x197   : > { %v863_v36 = vsel %vm403_vm1, %v854_v38, %v856_v60 }
 0x198   : > { %v882_v58 = vmul.f32 %v3063_v35, %v863_v36 }
 0x19a   : > { %v860_v46 = vpop.permute.xlu0 %859  ;;  %v858_v62 = vpop.permute.xlu1 %857  ;;  %v1078_v48 = vpack.c.bf16 %v882_v58, %v850_v23 }
 0x19b   : > { %v864_v56 = vsel %vm403_vm1, %v860_v46, %v854_v38  ;;  %v861_v39 = vsel %vm403_vm1, %v858_v62, %v860_v46  ;;  %v862_v7 = vsel %vm403_vm1, %v856_v60, %v858_v62  ;;  %v1097_v38 = vld [vmem:[%s3845_s3] sm:$0xf] }
 0x19c   : > { %v881_v57 = vmul.f32 %v3085_v45, %v864_v56  ;;  %v883_v37 = vmul.f32 %v3089_v53, %v862_v7  ;;  %v884_v33 = vmul.f32 %v3097_v6, %v861_v39  ;;  %1129 = vmatprep.subr.bf16.mxu0 %v1078_v48 }
 0x19e   : > { %v1077_v15 = vpack.c.bf16 %v881_v57, %v849_v44  ;;  %v1080_v59 = vpack.c.bf16 %v884_v33, %v852_v47  ;;  %v1079_v63 = vpack.c.bf16 %v883_v37, %v851_v17 }
 0x1a0   : > { %1130 = vmatpush1.bf16.msra.mxu0 %v1077_v15  ;;  %1170 = vmatprep.subr.bf16.mxu1 %v1080_v59 }
 0x1a1   : > { %1171 = vmatpush1.bf16.msra.mxu1 %v1079_v63 }
 0x1a3   : > { %2239 = vmatmul.mubr.msk.bf16.vlgmr.msra.gmra.mxu0 %vm1098_vm9, %v1097_v38 }
 0x1a4   : > { %2241 = vmatmul.mubr.msk.bf16.vlgmr.msra.gmra.mxu1 %vm1098_vm9, %v1097_v38  ;;  %1454 = vmatprep.mubr.bf16.mxu0 %v3920_v51 }
 0x1a5   : > { %1497 = vmatprep.mubr.bf16.mxu1 %v3920_v51 }
 0x1a7   : > { %v1199_v60 = vpop.permute.xlu1 %1198  ;;  %v1217_v36 = vpop.permute.xlu0 %1216 }
 0x1a8   : > { %v1219_v23 = vmul.f32 %v1217_v36, %v2431_v10  ;;  %v1220_v58 = vmul.f32 %v1217_v36, %v2441_v12  ;;  %v1221_v21 = vmul.f32 %v1217_v36, %v2428_v9  ;;  %v1222_v17 = vmul.f32 %v1217_v36, %v2438_v11 }
 0x1ac   : > { %v1207_v43 = vpop.permute.xlu1 %1206 }
 0x1b1   : > { %v1225_v4 = vpop.permute.xlu1 %1224 }
 0x1b2   : > { %v1227_v48 = vadd.f32 %v1225_v4, %v1219_v23  ;;  %v1228_v57 = vadd.f32 %v1225_v4, %v1220_v58  ;;  %v1229_v37 = vadd.f32 %v1225_v4, %v1221_v21  ;;  %v1230_v38 = vadd.f32 %v1225_v4, %v1222_v17 }
 0x263   : > { %v1149_v44 = vpop.f32.mrf.mxu0 }
 0x264   : > { %v1201_v46 = vmul.f32 %v1199_v60, %v1149_v44  ;;  %v1190_v62 = vpop.f32.mrf.mxu1 }
 0x265   : > { %v1203_v56 = vmul.f32 %v1199_v60, %v1190_v62  ;;  %v1151_v39 = vpop.f32.mrf.mxu0 }
 0x266   : > { %v1209_v7 = vadd.f32 %v1207_v43, %v1201_v46  ;;  %v1202_v47 = vmul.f32 %v1199_v60, %v1151_v39  ;;  %v1192_v33 = vpop.f32.mrf.mxu1 }
 0x267   : > { %v1211_v15 = vadd.f32 %v1207_v43, %v1203_v56  ;;  %v1204_v10 = vmul.f32 %v1199_v60, %v1192_v33  ;;  %v1153_v59 = vpop.f32.mrf.mxu0 }
 0x268   : > { %v1210_v63 = vadd.f32 %v1207_v43, %v1202_v47  ;;  %v1231_v12 = vadd.f32 %v1227_v48, %v1209_v7  ;;  %v1194_v9 = vpop.f32.mrf.mxu1 }
 0x269   : > { %v1212_v3 = vadd.f32 %v1207_v43, %v1204_v10  ;;  %v1154_v44 = vpop.f32.mrf.mxu0  ;;  %v1233_v23 = vadd.f32 %v1229_v37, %v1211_v15  ;;  %v3937_v43 = vmov 1  }
 0x26a   : > { %v1232_v51 = vadd.f32 %v1228_v57, %v1210_v63  ;;  %v3124_v1 = vmax.f32 %v1231_v12, 0.0  ;;  %v1195_v11 = vpop.f32.mrf.mxu1 }
 0x26b   : > { %v1234_v46 = vadd.f32 %v1230_v38, %v1212_v3  ;;  %v3130_v58 = vmax.f32 %v1233_v23, 0.0  ;;  %v3195_v3 = vld [vmem:[%s2514_s28 + $0x10] sm:$0xff] }
 0x26c   : > { %3933 = vst [vmem:[#allocation15_spill] sm:$0xff] %v3124_v1  ;;  %v3126_v36 = vmax.f32 %v1232_v51, 0.0  ;;  %1354 = vrot.lane.b32.xlu0 %v3124_v1, %s2339_s24  ;;  %v3200_v51 = vld [vmem:[%s2514_s28 + $0x18] sm:$0xff] }
 0x26d   : > { %3935 = vst [vmem:[#allocation17_spill] sm:$0xff] %v3130_v58  ;;  %v3134_v60 = vmax.f32 %v1234_v46, 0.0 }
 0x26e   : > { %3934 = vst [vmem:[#allocation16_spill] sm:$0xff] %v3126_v36  ;;  %1356 = vrot.lane.b32.xlu1 %v3126_v36, %s2339_s24 }
 0x26f   : > { %3936 = vst [vmem:[#allocation18_spill] sm:$0xff] %v3134_v60 }
 0x270   : > { %1358 = vrot.lane.b32.xlu0 %v3130_v58, %s2339_s24 }
 0x272   : > { %1360 = vrot.lane.b32.xlu1 %v3134_v60, %s2339_s24 }
 0x274   : > { %1322 = vrot.lane.b32.xlu0 %v3124_v1, %s2336_s22 }
 0x276   : > { %1324 = vrot.lane.b32.xlu1 %v3126_v36, %s2336_s22 }
 0x278   : > { %1326 = vrot.lane.b32.xlu0 %v3130_v58, %s2336_s22 }
 0x27a   : > { %1328 = vrot.lane.b32.xlu1 %v3134_v60, %s2336_s22 }
 0x27c   : > { %1338 = vrot.lane.b32.xlu0 %v3124_v1, %s2337_s23 }
 0x27e   : > { %1340 = vrot.lane.b32.xlu1 %v3126_v36, %s2337_s23 }
 0x280   : > { %1342 = vrot.lane.b32.xlu0 %v3130_v58, %s2337_s23 }
 0x282   : > { %1344 = vrot.lane.b32.xlu1 %v3134_v60, %s2337_s23 }
 0x284   : > { %1306 = vrot.lane.b32.xlu0 %v3124_v1, %s2333_s21 }
 0x286   : > { %1308 = vrot.lane.b32.xlu1 %v3126_v36, %s2333_s21 }
 0x288   : > { %1310 = vrot.lane.b32.xlu0 %v3130_v58, %s2333_s21 }
 0x28a   : > { %1312 = vrot.lane.b32.xlu1 %v3134_v60, %s2333_s21 }
 0x28c   : > { %1274 = vrot.lane.b32.xlu0 %v3124_v1, %s2328_s19 }
 0x28e   : > { %1276 = vrot.lane.b32.xlu1 %v3126_v36, %s2328_s19 }
 0x290   : > { %1278 = vrot.lane.b32.xlu0 %v3130_v58, %s2328_s19 }
 0x292   : > { %1280 = vrot.lane.b32.xlu1 %v3134_v60, %s2328_s19 }
 0x294   : > { %1290 = vrot.lane.b32.xlu0 %v3124_v1, %s2331_s20 }
 0x296   : > { %1292 = vrot.lane.b32.xlu1 %v3126_v36, %s2331_s20 }
 0x298   : > { %1294 = vrot.lane.b32.xlu0 %v3130_v58, %s2331_s20 }
 0x29a   : > { %1296 = vrot.lane.b32.xlu1 %v3134_v60, %s2331_s20 }
 0x29c   : > { %1242 = vrot.lane.b32.xlu0 %v3124_v1, %s2326_s15 }
 0x29e   : > { %1244 = vrot.lane.b32.xlu1 %v3126_v36, %s2326_s15 }
 0x2a0   : > { %1246 = vrot.lane.b32.xlu0 %v3130_v58, %s2326_s15 }
 0x2a2   : > { %1248 = vrot.lane.b32.xlu1 %v3134_v60, %s2326_s15 }
 0x2a4   : > { %1258 = vrot.lane.b32.xlu0 %v3124_v1, %s2327_s16 }
 0x2a6   : > { %1260 = vrot.lane.b32.xlu1 %v3126_v36, %s2327_s16 }
 0x2a8   : > { %1262 = vrot.lane.b32.xlu0 %v3130_v58, %s2327_s16 }
 0x2aa   : > { %1264 = vrot.lane.b32.xlu1 %v3134_v60, %s2327_s16 }
 0x2ac   : > { %1394 = vperm.xlu0 %2298, %v3195_v3  }
 0x2ae   : > { %1399 = vperm.xlu1 %2301, %v3200_v51  }
 0x2b0   : > { %2302 = vset.pattern.permute.xlu0 %v3937_v43 }
 0x2b2   : > { %2303 = vset.pattern.permute.xlu1 %v3937_v43 }
 0x2de   : > { %v1355_v4 = vpop.permute.xlu0 %1354 }
 0x2e0   : > { %v1357_v21 = vpop.permute.xlu1 %1356 }
 0x2e1   : > { %v1364_v62 = vsel %vm557_vm7, %v1355_v4, %v1357_v21 }
 0x2e2   : > { %v1366_v48 = vmul.f32 %v1364_v62, %v2895_v49  ;;  %v1359_v17 = vpop.permute.xlu0 %1358 }
 0x2e3   : > { %v1363_v56 = vsel %vm557_vm7, %v1357_v21, %v1359_v17 }
 0x2e4   : > { %v1386_v39 = vpack.c.bf16 %v1366_v48, %v1366_v48  ;;  %v1367_v7 = vmul.f32 %v1363_v56, %v2900_v20  ;;  %v1361_v47 = vpop.permute.xlu1 %1360 }
 0x2e5   : > { %v1362_v57 = vsel %vm557_vm7, %v1359_v17, %v1361_v47  ;;  %v1365_v37 = vsel %vm557_vm7, %v1361_v47, %v1355_v4 }
 0x2e6   : > { %v1387_v33 = vpack.c.bf16 %v1367_v7, %v1367_v7  ;;  %v1368_v15 = vmul.f32 %v1362_v57, %v2907_v27  ;;  %v1369_v10 = vmul.f32 %v1365_v37, %v2903_v19  ;;  %v1323_v59 = vpop.permute.xlu0 %1322  ;;  %v1411_v9 = vsel %vm1102_vm8, %v1386_v39, 0 }
 0x2e8   : > { %v1388_v63 = vpack.c.bf16 %v1368_v15, %v1368_v15  ;;  %v1389_v12 = vpack.c.bf16 %v1369_v10, %v1369_v10  ;;  %v1325_v38 = vpop.permute.xlu1 %1324  ;;  %2245 = vmatprep.subr.msk.bf16.mxu0 %vm1102_vm8, %v1387_v33 }
 0x2e9   : > { %1429 = vmatpush1.bf16.msra.mxu0 %v1411_v9  ;;  %v1332_v62 = vsel %vm507_vm5, %v1323_v59, %v1325_v38 }
 0x2ea   : > { %2247 = vmatprep.subr.msk.bf16.mxu1 %vm1102_vm8, %v1389_v12  ;;  %v1327_v44 = vpop.permute.xlu0 %1326  ;;  %v1417_v23 = vsel %vm1102_vm8, %v1388_v63, 0  ;;  %v1334_v33 = vmul.f32 %v1332_v62, %v2952_v8 }
 0x2eb   : > { %1472 = vmatpush1.bf16.msra.mxu1 %v1417_v23  ;;  %v1331_v4 = vsel %vm507_vm5, %v1325_v38, %v1327_v44 }
 0x2ec   : > { %v1329_v11 = vpop.permute.xlu1 %1328  ;;  %v1335_v47 = vmul.f32 %v1331_v4, %v2928_v26 }
 0x2ed   : > { %v1330_v48 = vsel %vm507_vm5, %v1327_v44, %v1329_v11  ;;  %v1333_v56 = vsel %vm507_vm5, %v1329_v11, %v1323_v59 }
 0x2ee   : > { %v1339_v46 = vpop.permute.xlu0 %1338  ;;  %v1336_v15 = vmul.f32 %v1330_v48, %v2933_v30  ;;  %v1337_v63 = vmul.f32 %v1333_v56, %v2925_v31 }
 0x2f0   : > { %v1341_v43 = vpop.permute.xlu1 %1340 }
 0x2f1   : > { %v1348_v21 = vsel %vm532_vm6, %v1339_v46, %v1341_v43 }
 0x2f2   : > { %v1343_v17 = vpop.permute.xlu0 %1342  ;;  %v1350_v39 = vmul.f32 %v1348_v21, %v2938_v52 }
 0x2f3   : > { %v1347_v7 = vsel %vm532_vm6, %v1341_v43, %v1343_v17 }
 0x2f4   : > { %v1351_v57 = vmul.f32 %v1347_v7, %v2946_v16  ;;  %v1345_v37 = vpop.permute.xlu1 %1344  ;;  %v1382_v23 = vpack.c.bf16 %v1350_v39, %v1334_v33 }
 0x2f5   : > { %v1346_v10 = vsel %vm532_vm6, %v1343_v17, %v1345_v37  ;;  %v1349_v59 = vsel %vm532_vm6, %v1345_v37, %v1339_v46 }
 0x2f6   : > { %v1352_v12 = vmul.f32 %v1346_v10, %v2949_v61  ;;  %v1353_v38 = vmul.f32 %v1349_v59, %v2943_v24  ;;  %v1307_v9 = vpop.permute.xlu0 %1306  ;;  %v1383_v44 = vpack.c.bf16 %v1351_v57, %v1335_v47 }
 0x2f8   : > { %v1384_v11 = vpack.c.bf16 %v1352_v12, %v1336_v15  ;;  %v1309_v43 = vpop.permute.xlu1 %1308  ;;  %1430 = vmatprep.subr.bf16.mxu0 %v1383_v44  ;;  %v1385_v4 = vpack.c.bf16 %v1353_v38, %v1337_v63 }
 0x2f9   : > { %v1316_v21 = vsel %vm482_vm4, %v1307_v9, %v1309_v43  ;;  %1431 = vmatpush1.bf16.msra.mxu0 %v1382_v23 }
 0x2fa   : > { %1473 = vmatprep.subr.bf16.mxu1 %v1385_v4  ;;  %v1311_v62 = vpop.permute.xlu0 %1310  ;;  %v1318_v46 = vmul.f32 %v1316_v21, %v2974_v28 }
 0x2fb   : > { %v1315_v48 = vsel %vm482_vm4, %v1309_v43, %v1311_v62  ;;  %1474 = vmatpush1.bf16.msra.mxu1 %v1384_v11 }
 0x2fc   : > { %v1319_v17 = vmul.f32 %v1315_v48, %v2982_v0  ;;  %v1313_v56 = vpop.permute.xlu1 %1312  ;;  %v1378_v15 = vpack.c.bf16 %v1318_v46, %v3124_v1 }
 0x2fd   : > { %v1314_v39 = vsel %vm482_vm4, %v1311_v62, %v1313_v56  ;;  %v1317_v7 = vsel %vm482_vm4, %v1313_v56, %v1307_v9 }
 0x2fe   : > { %v1320_v47 = vmul.f32 %v1314_v39, %v2985_v41  ;;  %v1321_v57 = vmul.f32 %v1317_v7, %v2977_v2  ;;  %v1275_v37 = vpop.permute.xlu0 %1274  ;;  %v1379_v33 = vpack.c.bf16 %v1319_v17, %v3126_v36 }
 0x300   : > { %v1380_v10 = vpack.c.bf16 %v1320_v47, %v3130_v58  ;;  %v1277_v59 = vpop.permute.xlu1 %1276  ;;  %1432 = vmatprep.subr.bf16.mxu0 %v1379_v33  ;;  %v1381_v63 = vpack.c.bf16 %v1321_v57, %v3134_v60  ;;  %v3940_v60 = vmov 5  }
 0x301   : > { %1433 = vmatpush1.bf16.msra.mxu0 %v1378_v15  ;;  %v1284_v44 = vsel %vm432_vm2, %v1275_v37, %v1277_v59 }
 0x302   : > { %1475 = vmatprep.subr.bf16.mxu1 %v1381_v63  ;;  %v1279_v12 = vpop.permute.xlu0 %1278  ;;  %v1287_v43 = vmul.f32 %v1284_v44, %v3003_v29 }
 0x303   : > { %1476 = vmatpush1.bf16.msra.mxu1 %v1380_v10  ;;  %v1283_v17 = vsel %vm432_vm2, %v1277_v59, %v1279_v12 }
 0x304   : > { %v1281_v38 = vpop.permute.xlu1 %1280  ;;  %v1288_v63 = vmul.f32 %v1283_v17, %v3017_v18 }
 0x305   : > { %v1282_v62 = vsel %vm432_vm2, %v1279_v12, %v1281_v38  ;;  %v1285_v46 = vsel %vm432_vm2, %v1281_v38, %v1275_v37 }
 0x306   : > { %v1291_v9 = vpop.permute.xlu0 %1290  ;;  %v1286_v33 = vmul.f32 %v1285_v46, %v3013_v55  ;;  %v1289_v37 = vmul.f32 %v1282_v62, %v3021_v25 }
 0x308   : > { %v1293_v23 = vpop.permute.xlu1 %1292 }
 0x309   : > { %v1300_v11 = vsel %vm457_vm3, %v1291_v9, %v1293_v23 }
 0x30a   : > { %v1303_v4 = vmul.f32 %v1300_v11, %v3007_v34  ;;  %v1295_v21 = vpop.permute.xlu0 %1294 }
 0x30b   : > { %v1299_v48 = vsel %vm457_vm3, %v1293_v23, %v1295_v21 }
 0x30c   : > { %v1297_v56 = vpop.permute.xlu1 %1296  ;;  %v1375_v39 = vpack.c.bf16 %v1303_v4, %v1287_v43  ;;  %v1304_v7 = vmul.f32 %v1299_v48, %v3033_v54 }
 0x30d   : > { %v1298_v47 = vsel %vm457_vm3, %v1295_v21, %v1297_v56  ;;  %v1301_v57 = vsel %vm457_vm3, %v1297_v56, %v1291_v9 }
 0x30e   : > { %v1302_v15 = vmul.f32 %v1301_v57, %v3029_v14  ;;  %v1305_v10 = vmul.f32 %v1298_v47, %v3041_v50  ;;  %1434 = vmatprep.subr.bf16.mxu0 %v1375_v39  ;;  %v1243_v59 = vpop.permute.xlu0 %1242  ;;  %v1376_v23 = vpack.c.bf16 %v1304_v7, %v1288_v63 }
 0x310   : > { %v1374_v12 = vpack.c.bf16 %v1302_v15, %v1286_v33  ;;  %v1245_v38 = vpop.permute.xlu1 %1244  ;;  %v1377_v44 = vpack.c.bf16 %v1305_v10, %v1289_v37 }
 0x311   : > { %v1252_v4 = vsel %vm386_vm0, %v1243_v59, %v1245_v38 }
 0x312   : > { %1435 = vmatpush1.bf16.msra.mxu0 %v1374_v12  ;;  %1477 = vmatprep.subr.bf16.mxu1 %v1377_v44  ;;  %v1247_v11 = vpop.permute.xlu0 %1246  ;;  %v1255_v46 = vmul.f32 %v1252_v4, %v3059_v40  ;;  %v2311_v4 = vld [vmem:[%s3847_s5] sm:$0xff]  }
 0x313   : > { %1478 = vmatpush1.bf16.msra.mxu1 %v1376_v23  ;;  %v1251_v47 = vsel %vm386_vm0, %v1245_v38, %v1247_v11 }
 0x314   : > { %v1249_v9 = vpop.permute.xlu1 %1248  ;;  %v1256_v38 = vmul.f32 %v1251_v47, %v3073_v22 }
 0x315   : > { %v1250_v56 = vsel %vm386_vm0, %v1247_v11, %v1249_v9  ;;  %v1253_v39 = vsel %vm386_vm0, %v1249_v9, %v1243_v59 }
 0x316   : > { %v1259_v43 = vpop.permute.xlu0 %1258  ;;  %v1254_v63 = vmul.f32 %v1253_v39, %v3069_v5  ;;  %v1257_v59 = vmul.f32 %v1250_v56, %v3077_v32 }
 0x318   : > { %v1261_v21 = vpop.permute.xlu1 %1260 }
 0x319   : > { %v1268_v62 = vsel %vm403_vm1, %v1259_v43, %v1261_v21 }
 0x31a   : > { %v1271_v48 = vmul.f32 %v1268_v62, %v3063_v35  ;;  %v1263_v17 = vpop.permute.xlu0 %1262 }
 0x31b   : > { %v1267_v7 = vsel %vm403_vm1, %v1261_v21, %v1263_v17 }
 0x31c   : > { %v1265_v57 = vpop.permute.xlu1 %1264  ;;  %v1371_v33 = vpack.c.bf16 %v1271_v48, %v1255_v46  ;;  %v1272_v37 = vmul.f32 %v1267_v7, %v3089_v53 }
 0x31d   : > { %v1266_v15 = vsel %vm403_vm1, %v1263_v17, %v1265_v57  ;;  %v1269_v10 = vsel %vm403_vm1, %v1265_v57, %v1259_v43 }
 0x31e   : > { %v1270_v12 = vmul.f32 %v1269_v10, %v3085_v45  ;;  %v1273_v44 = vmul.f32 %v1266_v15, %v3097_v6  ;;  %1436 = vmatprep.subr.bf16.mxu0 %v1371_v33  ;;  %v1372_v9 = vpack.c.bf16 %v1272_v37, %v1256_v38 }
 0x320   : > { %v1370_v23 = vpack.c.bf16 %v1270_v12, %v1254_v63  ;;  %v1373_v11 = vpack.c.bf16 %v1273_v44, %v1257_v59  ;;  %v3939_v12 = vmov 3  }
 0x322   : > { %1437 = vmatpush1.bf16.msra.mxu0 %v1370_v23  ;;  %1479 = vmatprep.subr.bf16.mxu1 %v1373_v11 }
 0x323   : > { %1480 = vmatpush1.bf16.msra.mxu1 %v1372_v9 }
 0x325   : > { %2246 = vmatmul.mubr.msk.bf16.vlgmr.msra.gmra.mxu0 %vm1098_vm9, %v2311_v4 }
 0x326   : > { %2248 = vmatmul.mubr.msk.bf16.vlgmr.msra.gmra.mxu1 %vm1098_vm9, %v2311_v4 }
 0x327   : > { %v1395_v43 = vpop.permute.xlu0 %1394 }
 0x329   : > { %v1400_v17 = vpop.permute.xlu1 %1399 }
 0x3e5   : > { %v1456_v21 = vpop.f32.mrf.mxu0 }
 0x3e6   : > { %v1457_v62 = vadd.f32 %v1456_v21, %v1395_v43  ;;  %v1499_v46 = vpop.f32.mrf.mxu1 }
 0x3e7   : > { %v1458_v48 = vpop.f32.mrf.mxu0  ;;  %v1500_v39 = vadd.f32 %v1499_v46, %v1395_v43 }
 0x3e8   : > { %v3315_v56 = vmax.f32 %v1457_v62, 0.0  ;;  %v1501_v7 = vpop.f32.mrf.mxu1  ;;  %v1459_v44 = vadd.f32 %v1458_v48, %v1395_v43 }
 0x3e9   : > { %v1460_v47 = vpop.f32.mrf.mxu0  ;;  %v3319_v15 = vmax.f32 %v1500_v39, 0.0  ;;  %v1502_v11 = vadd.f32 %v1501_v7, %v1395_v43  ;;  %v2312_v7 = vld [vmem:[%s3848_s6 + $0x4] ss:$8 sps:$4 sm:$0xff]  }
 0x3ea   : > { %v1461_v57 = vadd.f32 %v1460_v47, %v1400_v17  ;;  %v1503_v33 = vpop.f32.mrf.mxu1  ;;  %1708 = vrot.lane.b32.xlu0 %v3315_v56, %s2337_s23  ;;  %v3389_v23 = vmax.f32 %v1459_v44, 0.0  ;;  %2251 = vmatprep.mubr.msk.bf16.mxu0 %vm1819_vm10, %v2312_v7 }
 0x3eb   : > { %v1504_v37 = vadd.f32 %v1503_v33, %v1400_v17  ;;  %v1462_v38 = vpop.f32.mrf.mxu0  ;;  %v3395_v21 = vmax.f32 %v1502_v11, 0.0  ;;  %2252 = vmatprep.mubr.msk.bf16.mxu1 %vm1819_vm10, %v2312_v7 }
 0x3ec   : > { %v3321_v10 = vmax.f32 %v1461_v57, 0.0  ;;  %v1463_v9 = vadd.f32 %v1462_v38, %v1400_v17  ;;  %v1505_v4 = vpop.f32.mrf.mxu1 }
 0x3ed   : > { %v3323_v63 = vmax.f32 %v1504_v37, 0.0  ;;  %v1506_v46 = vadd.f32 %v1505_v4, %v1400_v17  ;;  %v3938_v4 = vmov 4  }
 0x3ee   : > { %1710 = vrot.lane.b32.xlu1 %v3321_v10, %s2337_s23  ;;  %1716 = vrot.lane.b32.xlu0 %v3319_v15, %s2337_s23  ;;  %v3397_v62 = vmax.f32 %v1463_v9, 0.0 }
 0x3ef   : > { %v3403_v43 = vmax.f32 %v1506_v46, 0.0 }
 0x3f2   : > { %1718 = vrot.lane.b32.xlu1 %v3323_v63, %s2337_s23  ;;  %1676 = vrot.lane.b32.xlu0 %v3315_v56, %s2336_s22 }
 0x3f6   : > { %1678 = vrot.lane.b32.xlu1 %v3321_v10, %s2336_s22  ;;  %1684 = vrot.lane.b32.xlu0 %v3319_v15, %s2336_s22 }
 0x3fa   : > { %1686 = vrot.lane.b32.xlu1 %v3323_v63, %s2336_s22  ;;  %1644 = vrot.lane.b32.xlu0 %v3315_v56, %s2333_s21 }
 0x3fe   : > { %1646 = vrot.lane.b32.xlu1 %v3321_v10, %s2333_s21  ;;  %1652 = vrot.lane.b32.xlu0 %v3319_v15, %s2333_s21 }
 0x402   : > { %1654 = vrot.lane.b32.xlu1 %v3323_v63, %s2333_s21  ;;  %1612 = vrot.lane.b32.xlu0 %v3315_v56, %s2331_s20 }
 0x406   : > { %1614 = vrot.lane.b32.xlu1 %v3321_v10, %s2331_s20  ;;  %1620 = vrot.lane.b32.xlu0 %v3319_v15, %s2331_s20 }
 0x40a   : > { %1622 = vrot.lane.b32.xlu1 %v3323_v63, %s2331_s20  ;;  %1580 = vrot.lane.b32.xlu0 %v3315_v56, %s2328_s19 }
 0x40e   : > { %1582 = vrot.lane.b32.xlu1 %v3321_v10, %s2328_s19  ;;  %1588 = vrot.lane.b32.xlu0 %v3319_v15, %s2328_s19 }
 0x412   : > { %1590 = vrot.lane.b32.xlu1 %v3323_v63, %s2328_s19  ;;  %1548 = vrot.lane.b32.xlu0 %v3315_v56, %s2327_s16 }
 0x416   : > { %1550 = vrot.lane.b32.xlu1 %v3321_v10, %s2327_s16  ;;  %1556 = vrot.lane.b32.xlu0 %v3319_v15, %s2327_s16 }
 0x41a   : > { %1558 = vrot.lane.b32.xlu1 %v3323_v63, %s2327_s16  ;;  %1516 = vrot.lane.b32.xlu0 %v3315_v56, %s2326_s15 }
 0x41e   : > { %1518 = vrot.lane.b32.xlu1 %v3321_v10, %s2326_s15  ;;  %1524 = vrot.lane.b32.xlu0 %v3319_v15, %s2326_s15 }
 0x422   : > { %1526 = vrot.lane.b32.xlu1 %v3323_v63, %s2326_s15  ;;  %1740 = vrot.lane.b32.xlu0 %v3315_v56, %s2339_s24 }
 0x426   : > { %1742 = vrot.lane.b32.xlu1 %v3321_v10, %s2339_s24  ;;  %1748 = vrot.lane.b32.xlu0 %v3319_v15, %s2339_s24 }
 0x42a   : > { %1750 = vrot.lane.b32.xlu1 %v3323_v63, %s2339_s24  ;;  %1712 = vrot.lane.b32.xlu0 %v3389_v23, %s2337_s23 }
 0x42e   : > { %1714 = vrot.lane.b32.xlu1 %v3397_v62, %s2337_s23  ;;  %1720 = vrot.lane.b32.xlu0 %v3395_v21, %s2337_s23 }
 0x432   : > { %1722 = vrot.lane.b32.xlu1 %v3403_v43, %s2337_s23  ;;  %1680 = vrot.lane.b32.xlu0 %v3389_v23, %s2336_s22 }
 0x436   : > { %1682 = vrot.lane.b32.xlu1 %v3397_v62, %s2336_s22  ;;  %1688 = vrot.lane.b32.xlu0 %v3395_v21, %s2336_s22 }
 0x43a   : > { %1690 = vrot.lane.b32.xlu1 %v3403_v43, %s2336_s22  ;;  %1648 = vrot.lane.b32.xlu0 %v3389_v23, %s2333_s21 }
 0x43e   : > { %1650 = vrot.lane.b32.xlu1 %v3397_v62, %s2333_s21  ;;  %1656 = vrot.lane.b32.xlu0 %v3395_v21, %s2333_s21 }
 0x442   : > { %1658 = vrot.lane.b32.xlu1 %v3403_v43, %s2333_s21  ;;  %1616 = vrot.lane.b32.xlu0 %v3389_v23, %s2331_s20 }
 0x446   : > { %1618 = vrot.lane.b32.xlu1 %v3397_v62, %s2331_s20  ;;  %1624 = vrot.lane.b32.xlu0 %v3395_v21, %s2331_s20 }
 0x44a   : > { %1626 = vrot.lane.b32.xlu1 %v3403_v43, %s2331_s20  ;;  %1584 = vrot.lane.b32.xlu0 %v3389_v23, %s2328_s19 }
 0x44e   : > { %1586 = vrot.lane.b32.xlu1 %v3397_v62, %s2328_s19  ;;  %1592 = vrot.lane.b32.xlu0 %v3395_v21, %s2328_s19 }
 0x452   : > { %1594 = vrot.lane.b32.xlu1 %v3403_v43, %s2328_s19  ;;  %1552 = vrot.lane.b32.xlu0 %v3389_v23, %s2327_s16 }
 0x456   : > { %1554 = vrot.lane.b32.xlu1 %v3397_v62, %s2327_s16  ;;  %1560 = vrot.lane.b32.xlu0 %v3395_v21, %s2327_s16 }
 0x45a   : > { %1562 = vrot.lane.b32.xlu1 %v3403_v43, %s2327_s16  ;;  %1520 = vrot.lane.b32.xlu0 %v3389_v23, %s2326_s15 }
 0x45c   : > { %v3449_v48 = vpop.permute.xlu0 %1708 }
 0x45e   : > { %1522 = vrot.lane.b32.xlu1 %v3397_v62, %s2326_s15  ;;  %1528 = vrot.lane.b32.xlu0 %v3395_v21, %s2326_s15 }
 0x460   : > { %v3455_v17 = vpop.permute.xlu1 %1710  ;;  %v3457_v39 = vpop.permute.xlu0 %1716 }
 0x462   : > { %1530 = vrot.lane.b32.xlu1 %v3403_v43, %s2326_s15  ;;  %1744 = vrot.lane.b32.xlu0 %v3389_v23, %s2339_s24 }
 0x464   : > { %v3466_v47 = vpop.permute.xlu1 %1718  ;;  %v3468_v57 = vpop.permute.xlu0 %1676 }
 0x466   : > { %1746 = vrot.lane.b32.xlu1 %v3397_v62, %s2339_s24  ;;  %1752 = vrot.lane.b32.xlu0 %v3395_v21, %s2339_s24 }
 0x468   : > { %v3474_v33 = vpop.permute.xlu1 %1678  ;;  %v3476_v37 = vpop.permute.xlu0 %1684 }
 0x46a   : > { %1754 = vrot.lane.b32.xlu1 %v3403_v43, %s2339_s24  ;;  %1910 = vperm.xlu0 %2302, %v3195_v3  }
 0x46c   : > { %v3481_v44 = vpop.permute.xlu1 %1686  ;;  %v3483_v38 = vpop.permute.xlu0 %1644 }
 0x46e   : > { %1914 = vperm.xlu1 %2303, %v3200_v51   ;;  %2305 = vset.pattern.permute.xlu0 %v3918_v13 }
 0x46f   : > { %1930 = vperm.xlu0 %2305, %v3200_v51  }
 0x470   : > { %v3488_v11 = vpop.permute.xlu1 %1646  ;;  %v3490_v9 = vpop.permute.xlu0 %1652 }
 0x472   : > { %2304 = vset.pattern.permute.xlu1 %v3918_v13 }
 0x473   : > { %1926 = vperm.xlu1 %2304, %v3195_v3   ;;  %2307 = vset.pattern.permute.xlu0 %v3938_v4 }
 0x474   : > { %v3495_v46 = vpop.permute.xlu1 %1654  ;;  %v3497_v7 = vpop.permute.xlu0 %1612  ;;  %2079 = vperm.xlu0 %2307, %v3195_v3  }
 0x477   : > { %2306 = vset.pattern.permute.xlu1 %v3939_v12 }
 0x478   : > { %v3501_v59 = vpop.permute.xlu1 %1614  ;;  %v3503_v58 = vpop.permute.xlu0 %1620  ;;  %1948 = vperm.xlu1 %2306, %v3195_v3   ;;  %2310 = vset.pattern.permute.xlu0 %v3940_v60 }
 0x47c   : > { %v3507_v13 = vpop.permute.xlu1 %1622  ;;  %v3509_v19 = vpop.permute.xlu0 %1580  ;;  %1952 = vperm.xlu1 %2306, %v3200_v51  }
 0x480   : > { %v3512_v27 = vpop.permute.xlu1 %1582  ;;  %v3514_v1 = vpop.permute.xlu0 %1588  ;;  %2308 = vset.pattern.permute.xlu1 %v3938_v4 }
 0x481   : > { %2083 = vperm.xlu1 %2308, %v3200_v51  }
 0x484   : > { %v3518_v12 = vpop.permute.xlu1 %1590  ;;  %v3520_v36 = vpop.permute.xlu0 %1548 }
 0x485   : > { %3941 = vst [vmem:[#allocation19_spill] sm:$0xff] %v3520_v36  ;;  %2309 = vset.pattern.permute.xlu1 %v3940_v60 }
 0x486   : > { %2123 = vperm.xlu1 %2309, %v3195_v3  }
 0x488   : > { %v3524_v20 = vpop.permute.xlu1 %1550  ;;  %v3526_v49 = vpop.permute.xlu0 %1556 }
 0x489   : > { %3942 = vst [vmem:[#allocation20_spill] sm:$0xff] %v3524_v20  ;;  %3943 = vst [vmem:[#allocation21_spill] sm:$0xff] %v3526_v49 }
 0x48c   : > { %v3528_v32 = vpop.permute.xlu1 %1558  ;;  %v3530_v5 = vpop.permute.xlu0 %1516 }
 0x48d   : > { %3944 = vst [vmem:[#allocation22_spill] sm:$0xff] %v3528_v32  ;;  %3945 = vst [vmem:[#allocation23_spill] sm:$0xff] %v3530_v5 }
 0x490   : > { %v3532_v22 = vpop.permute.xlu1 %1518  ;;  %v3534_v4 = vpop.permute.xlu0 %1524 }
 0x491   : > { %3946 = vst [vmem:[#allocation24_spill] sm:$0xff] %v3532_v22  ;;  %3947 = vst [vmem:[#allocation25_spill] sm:$0xff] %v3534_v4 }
 0x494   : > { %v3536_v51 = vpop.permute.xlu1 %1526  ;;  %v3538_v40 = vpop.permute.xlu0 %1740 }
 0x495   : > { %3948 = vst [vmem:[#allocation26_spill] sm:$0xff] %v3536_v51  ;;  %3949 = vst [vmem:[#allocation27_spill] sm:$0xff] %v3538_v40 }
 0x498   : > { %v3540_v6 = vpop.permute.xlu1 %1742  ;;  %v3542_v60 = vpop.permute.xlu0 %1748 }
 0x499   : > { %3950 = vst [vmem:[#allocation28_spill] sm:$0xff] %v3540_v6  ;;  %3951 = vst [vmem:[#allocation29_spill] sm:$0xff] %v3542_v60 }
 0x49c   : > { %v3544_v3 = vpop.permute.xlu1 %1750  ;;  %v1713_v45 = vpop.permute.xlu0 %1712 }
 0x49d   : > { %3952 = vst [vmem:[#allocation30_spill] sm:$0xff] %v3544_v3  ;;  %v1726_v53 = vsel %vm532_vm6, %v1713_v45, %v3457_v39  ;;  %v1728_v22 = vsel %vm532_vm6, %v3449_v48, %v1713_v45 }
 0x49e   : > { %v1732_v3 = vmul.f32 %v1728_v22, %v2938_v52  ;;  %v1733_v60 = vmul.f32 %v1726_v53, %v2946_v16 }
 0x4a0   : > { %v1715_v5 = vpop.permute.xlu1 %1714  ;;  %v1721_v4 = vpop.permute.xlu0 %1720 }
 0x4a1   : > { %v1727_v40 = vsel %vm532_vm6, %v1715_v5, %v3466_v47  ;;  %v1729_v6 = vsel %vm532_vm6, %v3455_v17, %v1715_v5  ;;  %v1724_v45 = vsel %vm532_vm6, %v3457_v39, %v1721_v4  ;;  %v1730_v20 = vsel %vm532_vm6, %v1721_v4, %v3449_v48 }
 0x4a2   : > { %v1736_v51 = vmul.f32 %v1729_v6, %v2938_v52  ;;  %v1737_v35 = vmul.f32 %v1727_v40, %v2946_v16  ;;  %v1734_v16 = vmul.f32 %v1724_v45, %v2949_v61  ;;  %v1735_v40 = vmul.f32 %v1730_v20, %v2943_v24 }
 0x4a4   : > { %v1800_v32 = vpack.c.bf16 %v1736_v51, %v1732_v3  ;;  %v1723_v36 = vpop.permute.xlu1 %1722  ;;  %v1681_v49 = vpop.permute.xlu0 %1680  ;;  %v1801_v5 = vpack.c.bf16 %v1737_v35, %v1733_v60 }
 0x4a5   : > { %v1725_v22 = vsel %vm532_vm6, %v3466_v47, %v1723_v36  ;;  %v1731_v52 = vsel %vm532_vm6, %v1723_v36, %v3455_v17  ;;  %v1694_v35 = vsel %vm507_vm5, %v1681_v49, %v3476_v37  ;;  %v1696_v48 = vsel %vm507_vm5, %v3468_v57, %v1681_v49 }
 0x4a6   : > { %v1738_v53 = vmul.f32 %v1725_v22, %v2949_v61  ;;  %v1739_v6 = vmul.f32 %v1731_v52, %v2943_v24  ;;  %1823 = vmatprep.subr.bf16.mxu0 %v1801_v5  ;;  %v1700_v61 = vmul.f32 %v1696_v48, %v2952_v8  ;;  %v1701_v4 = vmul.f32 %v1694_v35, %v2928_v26 }
 0x4a7   : > { %1824 = vmatpush1.bf16.msra.mxu0 %v1800_v32 }
 0x4a8   : > { %v1802_v39 = vpack.c.bf16 %v1738_v53, %v1734_v16  ;;  %v1683_v36 = vpop.permute.xlu1 %1682  ;;  %v1689_v17 = vpop.permute.xlu0 %1688  ;;  %v1803_v47 = vpack.c.bf16 %v1739_v6, %v1735_v40 }
 0x4a9   : > { %v1695_v20 = vsel %vm507_vm5, %v1683_v36, %v3481_v44  ;;  %v1697_v24 = vsel %vm507_vm5, %v3474_v33, %v1683_v36  ;;  %v1692_v32 = vsel %vm507_vm5, %v3476_v37, %v1689_v17  ;;  %v1698_v60 = vsel %vm507_vm5, %v1689_v17, %v3468_v57 }
 0x4aa   : > { %v1704_v51 = vmul.f32 %v1697_v24, %v2952_v8  ;;  %v1705_v49 = vmul.f32 %v1695_v20, %v2928_v26  ;;  %1866 = vmatprep.subr.bf16.mxu1 %v1803_v47  ;;  %v1702_v52 = vmul.f32 %v1692_v32, %v2933_v30  ;;  %v1703_v37 = vmul.f32 %v1698_v60, %v2925_v31 }
 0x4ab   : > { %1867 = vmatpush1.bf16.msra.mxu1 %v1802_v39 }
 0x4ac   : > { %v1796_v3 = vpack.c.bf16 %v1704_v51, %v1700_v61  ;;  %v1691_v45 = vpop.permute.xlu1 %1690  ;;  %v1649_v5 = vpop.permute.xlu0 %1648  ;;  %v1797_v22 = vpack.c.bf16 %v1705_v49, %v1701_v4 }
 0x4ad   : > { %v1693_v8 = vsel %vm507_vm5, %v3481_v44, %v1691_v45  ;;  %v1699_v26 = vsel %vm507_vm5, %v1691_v45, %v3474_v33  ;;  %v1662_v40 = vsel %vm482_vm4, %v1649_v5, %v3490_v9  ;;  %v1664_v44 = vsel %vm482_vm4, %v3483_v38, %v1649_v5 }
 0x4ae   : > { %v1706_v16 = vmul.f32 %v1693_v8, %v2933_v30  ;;  %v1707_v57 = vmul.f32 %v1699_v26, %v2925_v31  ;;  %1825 = vmatprep.subr.bf16.mxu0 %v1797_v22  ;;  %v1668_v48 = vmul.f32 %v1664_v44, %v2974_v28  ;;  %v1669_v39 = vmul.f32 %v1662_v40, %v2982_v0 }
 0x4af   : > { %1826 = vmatpush1.bf16.msra.mxu0 %v1796_v3  ;;  %v1791_v5 = vpack.c.bf16 %v3403_v43, %v3395_v21  ;;  %v3953_v21 = vpack.c.bf16 %v3321_v10, %v3315_v56 }
 0x4b0   : > { %v1798_v53 = vpack.c.bf16 %v1706_v16, %v1702_v52  ;;  %v1651_v33 = vpop.permute.xlu1 %1650  ;;  %v1657_v6 = vpop.permute.xlu0 %1656  ;;  %v1799_v35 = vpack.c.bf16 %v1707_v57, %v1703_v37 }
 0x4b1   : > { %v1663_v30 = vsel %vm482_vm4, %v1651_v33, %v3495_v46  ;;  %v1665_v31 = vsel %vm482_vm4, %v3488_v11, %v1651_v33  ;;  %v1660_v47 = vsel %vm482_vm4, %v3490_v9, %v1657_v6  ;;  %v1666_v20 = vsel %vm482_vm4, %v1657_v6, %v3483_v38 }
 0x4b2   : > { %v1672_v36 = vmul.f32 %v1665_v31, %v2974_v28  ;;  %v1673_v17 = vmul.f32 %v1663_v30, %v2982_v0  ;;  %1868 = vmatprep.subr.bf16.mxu1 %v1799_v35  ;;  %v1789_v9 = vpack.c.bf16 %v3397_v62, %v3389_v23  ;;  %v1670_v49 = vmul.f32 %v1660_v47, %v2985_v41 }
 0x4b3   : > { %1869 = vmatpush1.bf16.msra.mxu1 %v1798_v53  ;;  %v1671_v38 = vmul.f32 %v1666_v20, %v2977_v2 }
 0x4b4   : > { %v1792_v24 = vpack.c.bf16 %v1672_v36, %v1668_v48  ;;  %v1659_v61 = vpop.permute.xlu1 %1658  ;;  %v1617_v4 = vpop.permute.xlu0 %1616  ;;  %v1793_v51 = vpack.c.bf16 %v1673_v17, %v1669_v39 }
 0x4b5   : > { %v1661_v28 = vsel %vm482_vm4, %v3495_v46, %v1659_v61  ;;  %v1667_v0 = vsel %vm482_vm4, %v1659_v61, %v3488_v11  ;;  %v1630_v46 = vsel %vm457_vm3, %v1617_v4, %v3503_v58  ;;  %v1632_v11 = vsel %vm457_vm3, %v3497_v7, %v1617_v4 }
 0x4b6   : > { %v1674_v32 = vmul.f32 %v1661_v28, %v2985_v41  ;;  %v1675_v60 = vmul.f32 %v1667_v0, %v2977_v2  ;;  %1827 = vmatprep.subr.bf16.mxu0 %v1793_v51  ;;  %v1637_v22 = vmul.f32 %v1632_v11, %v3007_v34  ;;  %v1638_v8 = vmul.f32 %v1630_v46, %v3033_v54  ;;  %v3955_v51 = vld [vmem:[#allocation21_spill] sm:$0xff]  ;;  %v3956_v0 = vld [vmem:[#allocation19_spill] sm:$0xff]  ;;  %v3959_v46 = vld [vmem:[#allocation8_spill] sm:$0xff] }
 0x4b7   : > { %1828 = vmatpush1.bf16.msra.mxu0 %v1792_v24 }
 0x4b8   : > { %v1794_v3 = vpack.c.bf16 %v1674_v32, %v1670_v49  ;;  %v1619_v23 = vpop.permute.xlu1 %1618  ;;  %1829 = vmatprep.subr.bf16.mxu0 %v1789_v9  ;;  %v1625_v62 = vpop.permute.xlu0 %1624  ;;  %v1795_v45 = vpack.c.bf16 %v1675_v60, %v1671_v38  ;;  %v3957_v32 = vld [vmem:[#allocation22_spill] sm:$0xff] }
 0x4b9   : > { %v1631_v41 = vsel %vm457_vm3, %v1619_v23, %v3507_v13  ;;  %v1633_v2 = vsel %vm457_vm3, %v3501_v59, %v1619_v23  ;;  %v1628_v37 = vsel %vm457_vm3, %v3503_v58, %v1625_v62  ;;  %v1634_v16 = vsel %vm457_vm3, %v1625_v62, %v3497_v7 }
 0x4ba   : > { %v1641_v26 = vmul.f32 %v1633_v2, %v3007_v34  ;;  %v1642_v52 = vmul.f32 %v1631_v41, %v3033_v54  ;;  %1870 = vmatprep.subr.bf16.mxu1 %v1795_v45  ;;  %v1636_v7 = vmul.f32 %v1634_v16, %v3029_v14  ;;  %v1639_v44 = vmul.f32 %v1628_v37, %v3041_v50  ;;  %v3961_v16 = vld [vmem:[#allocation12_spill] sm:$0xff] }
 0x4bb   : > { %1830 = vmatpush1.bf16.msra.mxu0 %v3953_v21  ;;  %1871 = vmatpush1.bf16.msra.mxu1 %v1794_v3  ;;  %v3960_v3 = vld [vmem:[#allocation13_spill] sm:$0xff] }
 0x4bc   : > { %v1786_v43 = vpack.c.bf16 %v1642_v52, %v1638_v8  ;;  %v1627_v57 = vpop.permute.xlu1 %1626  ;;  %1872 = vmatprep.subr.bf16.mxu1 %v1791_v5  ;;  %v1585_v34 = vpop.permute.xlu0 %1584  ;;  %v1785_v40 = vpack.c.bf16 %v1641_v26, %v1637_v22 }
 0x4bd   : > { %v1629_v54 = vsel %vm457_vm3, %v3507_v13, %v1627_v57  ;;  %v1635_v58 = vsel %vm457_vm3, %v1627_v57, %v3501_v59  ;;  %v1598_v53 = vsel %vm432_vm2, %v1585_v34, %v3514_v1  ;;  %v1600_v13 = vsel %vm432_vm2, %v3509_v19, %v1585_v34 }
 0x4be   : > { %v1640_v56 = vmul.f32 %v1635_v58, %v3029_v14  ;;  %v1643_v10 = vmul.f32 %v1629_v54, %v3041_v50  ;;  %1831 = vmatprep.subr.bf16.mxu0 %v1785_v40  ;;  %v3954_v59 = vpack.c.bf16 %v3323_v63, %v3319_v15  ;;  %v1605_v31 = vmul.f32 %v1600_v13, %v3003_v29  ;;  %v3963_v54 = vld [vmem:[#allocation25_spill] sm:$0xff] }
 0x4bf   : > { %v1606_v48 = vmul.f32 %v1598_v53, %v3017_v18 }
 0x4c0   : > { %1873 = vmatpush1.bf16.msra.mxu1 %v3954_v59  ;;  %v1784_v33 = vpack.c.bf16 %v1640_v56, %v1636_v7  ;;  %v1587_v6 = vpop.permute.xlu1 %1586  ;;  %v1593_v35 = vpop.permute.xlu0 %1592  ;;  %v1787_v30 = vpack.c.bf16 %v1643_v10, %v1639_v44  ;;  %v3964_v7 = vld [vmem:[#allocation23_spill] sm:$0xff]  ;;  %v3965_v59 = vld [vmem:[#allocation26_spill] sm:$0xff] }
 0x4c1   : > { %v1599_v14 = vsel %vm432_vm2, %v1587_v6, %v3518_v12  ;;  %v1601_v50 = vsel %vm432_vm2, %v3512_v27, %v1587_v6  ;;  %v1596_v63 = vsel %vm432_vm2, %v3514_v1, %v1593_v35  ;;  %v1602_v36 = vsel %vm432_vm2, %v1593_v35, %v3509_v19  ;;  %v3966_v6 = vld [vmem:[#allocation24_spill] sm:$0xff] }
 0x4c2   : > { %v1609_v39 = vmul.f32 %v1601_v50, %v3003_v29  ;;  %v1610_v15 = vmul.f32 %v1599_v14, %v3017_v18  ;;  %1832 = vmatpush1.bf16.msra.mxu0 %v1784_v33  ;;  %1874 = vmatprep.subr.bf16.mxu1 %v1787_v30  ;;  %v1604_v1 = vmul.f32 %v1602_v36, %v3013_v55  ;;  %v3967_v30 = vld [vmem:[#allocation7_spill] sm:$0xff]  ;;  %v3968_v50 = vld [vmem:[#allocation10_spill] sm:$0xff] }
 0x4c3   : > { %v1607_v61 = vmul.f32 %v1596_v63, %v3021_v25 }
 0x4c4   : > { %v1782_v17 = vpack.c.bf16 %v1610_v15, %v1606_v48  ;;  %1875 = vmatpush1.bf16.msra.mxu1 %v1786_v43  ;;  %v1595_v47 = vpop.permute.xlu1 %1594  ;;  %v1553_v20 = vpop.permute.xlu0 %1552  ;;  %v1781_v24 = vpack.c.bf16 %v1609_v39, %v1605_v31  ;;  %v3962_v43 = vld [vmem:[#allocation14_spill] sm:$0xff] }
 0x4c5   : > { %v1597_v29 = vsel %vm432_vm2, %v3518_v12, %v1595_v47  ;;  %v1603_v18 = vsel %vm432_vm2, %v1595_v47, %v3512_v27  ;;  %v1566_v28 = vsel %vm403_vm1, %v1553_v20, %v3955_v51  ;;  %v1568_v12 = vsel %vm403_vm1, %v3956_v0, %v1553_v20 }
 0x4c6   : > { %v1608_v19 = vmul.f32 %v1603_v18, %v3013_v55  ;;  %v1611_v4 = vmul.f32 %v1597_v29, %v3021_v25  ;;  %1833 = vmatprep.subr.bf16.mxu0 %v1781_v24  ;;  %v3958_v55 = vld [vmem:[#allocation20_spill] sm:$0xff]  ;;  %v1573_v11 = vmul.f32 %v1568_v12, %v3959_v46  ;;  %v1574_v23 = vmul.f32 %v1566_v28, %v3960_v3  ;;  %v3969_v18 = vld [vmem:[#allocation9_spill] sm:$0xff]  ;;  %v3972_v12 = vld [vmem:[#allocation27_spill] sm:$0xff] }
 0x4c7   : > { %v3971_v28 = vld [vmem:[#allocation29_spill] sm:$0xff] }
 0x4c8   : > { %v1780_v9 = vpack.c.bf16 %v1608_v19, %v1604_v1  ;;  %v1555_v49 = vpop.permute.xlu1 %1554  ;;  %v1561_v27 = vpop.permute.xlu0 %1560  ;;  %v1783_v38 = vpack.c.bf16 %v1611_v4, %v1607_v61  ;;  %v3970_v61 = vld [vmem:[#allocation11_spill] sm:$0xff] }
 0x4c9   : > { %v1567_v60 = vsel %vm403_vm1, %v1555_v49, %v3957_v32  ;;  %v1569_v25 = vsel %vm403_vm1, %v3958_v55, %v1555_v49  ;;  %v1564_v41 = vsel %vm403_vm1, %v3955_v51, %v1561_v27  ;;  %v1570_v2 = vsel %vm403_vm1, %v1561_v27, %v3956_v0 }
 0x4ca   : > { %v1577_v62 = vmul.f32 %v1569_v25, %v3959_v46  ;;  %v1578_v45 = vmul.f32 %v1567_v60, %v3960_v3  ;;  %1834 = vmatpush1.bf16.msra.mxu0 %v1780_v9  ;;  %1876 = vmatprep.subr.bf16.mxu1 %v1783_v38  ;;  %v1572_v21 = vmul.f32 %v1570_v2, %v3961_v16  ;;  %v3973_v60 = vld [vmem:[#allocation30_spill] sm:$0xff]  ;;  %v3974_v25 = vld [vmem:[#allocation28_spill] sm:$0xff] }
 0x4cb   : > { %1877 = vmatpush1.bf16.msra.mxu1 %v1782_v17  ;;  %v1575_v57 = vmul.f32 %v1564_v41, %v3962_v43 }
 0x4cc   : > { %v1778_v5 = vpack.c.bf16 %v1578_v45, %v1574_v23  ;;  %v1563_v22 = vpop.permute.xlu1 %1562  ;;  %v1521_v8 = vpop.permute.xlu0 %1520  ;;  %v1777_v26 = vpack.c.bf16 %v1577_v62, %v1573_v11  ;;  %v3975_v11 = vld [vmem:[#allocation3_spill] sm:$0xff]  ;;  %v3976_v23 = vld [vmem:[#allocation4_spill] sm:$0xff] }
 0x4cd   : > { %v1565_v52 = vsel %vm403_vm1, %v3957_v32, %v1563_v22  ;;  %v1571_v37 = vsel %vm403_vm1, %v1563_v22, %v3958_v55  ;;  %v1534_v58 = vsel %vm386_vm0, %v1521_v8, %v3963_v54  ;;  %v1536_v44 = vsel %vm386_vm0, %v3964_v7, %v1521_v8 }
 0x4ce   : > { %v1576_v34 = vmul.f32 %v1571_v37, %v3961_v16  ;;  %v1579_v40 = vmul.f32 %v1565_v52, %v3962_v43  ;;  %1835 = vmatprep.subr.bf16.mxu0 %v1777_v26  ;;  %v1541_v14 = vmul.f32 %v1536_v44, %v3967_v30  ;;  %v1542_v31 = vmul.f32 %v1534_v58, %v3968_v50  ;;  %v3977_v16 = vld [vmem:[#allocation16_spill] sm:$0xff]  ;;  %v3978_v43 = vld [vmem:[#allocation15_spill] sm:$0xff] }
 0x4d0   : > { %v1776_v56 = vpack.c.bf16 %v1576_v34, %v1572_v21  ;;  %v1523_v10 = vpop.permute.xlu1 %1522  ;;  %v1529_v53 = vpop.permute.xlu0 %1528  ;;  %v1779_v13 = vpack.c.bf16 %v1579_v40, %v1575_v57  ;;  %v1944_v21 = vpack.c.bf16 %v3977_v16, %v3977_v16  ;;  %v1943_v57 = vpack.c.bf16 %v3978_v43, %v3978_v43  ;;  %v3979_v34 = vld [vmem:[#allocation6_spill] sm:$0xff] }
 0x4d1   : > { %v1535_v33 = vsel %vm386_vm0, %v1523_v10, %v3965_v59  ;;  %v1537_v35 = vsel %vm386_vm0, %v3966_v6, %v1523_v10  ;;  %v1532_v15 = vsel %vm386_vm0, %v3963_v54, %v1529_v53  ;;  %v1538_v63 = vsel %vm386_vm0, %v1529_v53, %v3964_v7  ;;  %v3980_v54 = vld [vmem:[#allocation5_spill] sm:$0xff] }
 0x4d2   : > { %v1545_v48 = vmul.f32 %v1537_v35, %v3967_v30  ;;  %v1546_v39 = vmul.f32 %v1535_v33, %v3968_v50  ;;  %1836 = vmatpush1.bf16.msra.mxu0 %v1776_v56  ;;  %1878 = vmatprep.subr.bf16.mxu1 %v1779_v13  ;;  %v1540_v1 = vmul.f32 %v1538_v63, %v3969_v18  ;;  %v1965_v53 = vsel %vm1102_vm8, %v1943_v57, 0  ;;  %v3981_v13 = vld [vmem:[#allocation18_spill] sm:$0xff]  ;;  %v3982_v33 = vld [vmem:[#allocation17_spill] sm:$0xff] }
 0x4d3   : > { %1879 = vmatpush1.bf16.msra.mxu1 %v1778_v5  ;;  %v1543_v19 = vmul.f32 %v1532_v15, %v3970_v61  ;;  %v3983_v35 = vmov 0  }
 0x4d4   : > { %v1774_v36 = vpack.c.bf16 %v1546_v39, %v1542_v31  ;;  %v1531_v17 = vpop.permute.xlu1 %1530  ;;  %v1745_v47 = vpop.permute.xlu0 %1744  ;;  %v1773_v20 = vpack.c.bf16 %v1545_v48, %v1541_v14  ;;  %v2315_v14 = vld [vmem:[%s3849_s7] sm:$0xff]  }
 0x4d5   : > { %v1533_v24 = vsel %vm386_vm0, %v3965_v59, %v1531_v17  ;;  %v1539_v29 = vsel %vm386_vm0, %v1531_v17, %v3966_v6  ;;  %v1758_v0 = vsel %vm557_vm7, %v1745_v47, %v3971_v28  ;;  %v1760_v9 = vsel %vm557_vm7, %v3972_v12, %v1745_v47 }
 0x4d6   : > { %v1544_v4 = vmul.f32 %v1539_v29, %v3969_v18  ;;  %v1547_v51 = vmul.f32 %v1533_v24, %v3970_v61  ;;  %1837 = vmatprep.subr.bf16.mxu0 %v1773_v20  ;;  %v1764_v3 = vmul.f32 %v1760_v9, %v3975_v11  ;;  %v1765_v62 = vmul.f32 %v1758_v0, %v3976_v23 }
 0x4d7   : > { %v1946_v59 = vpack.c.bf16 %v3981_v13, %v3981_v13  ;;  %v1945_v6 = vpack.c.bf16 %v3982_v33, %v3982_v33 }
 0x4d8   : > { %v1772_v49 = vpack.c.bf16 %v1544_v4, %v1540_v1  ;;  %v1747_v27 = vpop.permute.xlu1 %1746  ;;  %v1753_v38 = vpop.permute.xlu0 %1752  ;;  %v1775_v32 = vpack.c.bf16 %v1547_v51, %v1543_v19 }
 0x4d9   : > { %v1759_v55 = vsel %vm557_vm7, %v1747_v27, %v3973_v60  ;;  %v1761_v46 = vsel %vm557_vm7, %v3974_v25, %v1747_v27  ;;  %v1756_v2 = vsel %vm557_vm7, %v3971_v28, %v1753_v38  ;;  %v1762_v5 = vsel %vm557_vm7, %v1753_v38, %v3972_v12 }
 0x4da   : > { %v1768_v45 = vmul.f32 %v1761_v46, %v3975_v11  ;;  %v1769_v41 = vmul.f32 %v1759_v55, %v3976_v23  ;;  %1838 = vmatpush1.bf16.msra.mxu0 %v1772_v49  ;;  %1880 = vmatprep.subr.bf16.mxu1 %v1775_v32  ;;  %v1766_v40 = vmul.f32 %v1756_v2, %v3979_v34  ;;  %v1971_v30 = vsel %vm1102_vm8, %v1945_v6, 0 }
 0x4db   : > { %1881 = vmatpush1.bf16.msra.mxu1 %v1774_v36  ;;  %v1767_v58 = vmul.f32 %v1762_v5, %v3980_v54 }
 0x4dc   : > { %v1804_v22 = vpack.c.bf16 %v1768_v45, %v1764_v3  ;;  %v1755_v8 = vpop.permute.xlu1 %1754  ;;  %v1805_v26 = vpack.c.bf16 %v1769_v41, %v1765_v62 }
 0x4dd   : > { %v1757_v52 = vsel %vm557_vm7, %v3973_v60, %v1755_v8  ;;  %v1763_v37 = vsel %vm557_vm7, %v1755_v8, %v3974_v25 }
 0x4de   : > { %v1770_v7 = vmul.f32 %v1757_v52, %v3979_v34  ;;  %v1771_v44 = vmul.f32 %v1763_v37, %v3980_v54  ;;  %1853 = vmatprep.subr.bf16.mxu0 %v1805_v26 }
 0x4df   : > { %1854 = vmatpush2.bf16.msra.mxu0 %v1804_v22 }
 0x4e0   : > { %v1806_v56 = vpack.c.bf16 %v1770_v7, %v1766_v40  ;;  %2254 = vmatprep.subr.msk.bf16.mxu0 %vm1102_vm8, %v1944_v21  ;;  %v1807_v10 = vpack.c.bf16 %v1771_v44, %v1767_v58 }
 0x4e2   : > { %1856 = vmatmul.mubr.bf16.vlgmr.msra.gmra.mxu0 %v2314_v42  ;;  %1896 = vmatprep.subr.bf16.mxu1 %v1807_v10 }
 0x4e3   : > { %1897 = vmatpush2.bf16.msra.mxu1 %v1806_v56  ;;  %1991 = vmatpush1.bf16.msra.mxu0 %v1965_v53 }
 0x4e4   : > { %2256 = vmatprep.subr.msk.bf16.mxu1 %vm1102_vm8, %v1946_v59  ;;  %2008 = vmatprep.mubr.bf16.mxu0 %v3983_v35 }
 0x4e5   : > { %v1911_v15 = vpop.permute.xlu0 %1910 }
 0x4e6   : > { %1899 = vmatmul.mubr.bf16.vlgmr.msra.gmra.mxu1 %v2314_v42 }
 0x4e7   : > { %2034 = vmatpush1.bf16.msra.mxu1 %v1971_v30  ;;  %2051 = vmatprep.mubr.bf16.mxu1 %v3983_v35 }
 0x4e9   : > { %v1915_v50 = vpop.permute.xlu1 %1914 }
 0x4ea   : > { %2255 = vmatmul.mubr.msk.bf16.vlgmr.msra.gmra.mxu0 %vm1960_vm11, %v2315_v14  ;;  %v1931_v4 = vpop.permute.xlu0 %1930 }
 0x4ee   : > { %2257 = vmatmul.mubr.msk.bf16.vlgmr.msra.gmra.mxu1 %vm1960_vm11, %v2315_v14  ;;  %v1927_v31 = vpop.permute.xlu1 %1926 }
 0x4ef   : > { %v2080_v37 = vpop.permute.xlu0 %2079 }
 0x4f3   : > { %v1949_v63 = vpop.permute.xlu1 %1948 }
 0x4f7   : > { %v1953_v0 = vpop.permute.xlu1 %1952 }
 0x4fc   : > { %v2084_v34 = vpop.permute.xlu1 %2083 }
 0x5a2   : > { %v1857_v48 = vpop.f32.mrf.mxu0 }
 0x5a3   : > { %v1917_v47 = vmul.f32 %v1911_v15, %v1857_v48 }
 0x5a4   : > { %v1859_v39 = vpop.f32.mrf.mxu0 }
 0x5a5   : > { %v1918_v29 = vmul.f32 %v1911_v15, %v1859_v39  ;;  %v1933_v51 = vadd.f32 %v1927_v31, %v1917_v47 }
 0x5a6   : > { %v1861_v36 = vpop.f32.mrf.mxu0  ;;  %v1900_v17 = vpop.f32.mrf.mxu1 }
 0x5a7   : > { %v1921_v61 = vmul.f32 %v1915_v50, %v1861_v36  ;;  %v1919_v19 = vmul.f32 %v1911_v15, %v1900_v17  ;;  %v1934_v60 = vadd.f32 %v1927_v31, %v1918_v29 }
 0x5a8   : > { %v1863_v20 = vpop.f32.mrf.mxu0  ;;  %v1902_v24 = vpop.f32.mrf.mxu1 }
 0x5a9   : > { %v1920_v49 = vmul.f32 %v1911_v15, %v1902_v24  ;;  %v1922_v32 = vmul.f32 %v1915_v50, %v1863_v20  ;;  %v1935_v46 = vadd.f32 %v1927_v31, %v1919_v19  ;;  %v1937_v3 = vadd.f32 %v1931_v4, %v1921_v61 }
 0x5aa   : > { %v1904_v18 = vpop.f32.mrf.mxu1  ;;  %v2010_v1 = vpop.f32.mrf.mxu0 }
 0x5ab   : > { %v2011_v28 = vadd.f32 %v2010_v1, %v1949_v63  ;;  %v1923_v11 = vmul.f32 %v1915_v50, %v1904_v18  ;;  %v1936_v8 = vadd.f32 %v1927_v31, %v1920_v49  ;;  %v1938_v21 = vadd.f32 %v1931_v4, %v1922_v32 }
 0x5ac   : > { %v1906_v12 = vpop.f32.mrf.mxu1  ;;  %v2012_v9 = vpop.f32.mrf.mxu0 }
 0x5ad   : > { %v2062_v27 = vadd.f32 %v2011_v28, %v1933_v51  ;;  %v2013_v38 = vadd.f32 %v2012_v9, %v1949_v63  ;;  %v1924_v45 = vmul.f32 %v1915_v50, %v1906_v12  ;;  %v1939_v40 = vadd.f32 %v1931_v4, %v1923_v11 }
 0x5ae   : > { %v2014_v55 = vpop.f32.mrf.mxu0  ;;  %v2053_v25 = vpop.f32.mrf.mxu1 }
 0x5af   : > { %v2015_v23 = vadd.f32 %v2014_v55, %v1953_v0  ;;  %v2070_v62 = vmax.f32 %v2062_v27, 0.0  ;;  %v2063_v41 = vadd.f32 %v2013_v38, %v1934_v60  ;;  %v2054_v2 = vadd.f32 %v2053_v25, %v1949_v63 }
 0x5b0   : > { %v2055_v5 = vpop.f32.mrf.mxu1  ;;  %v2016_v22 = vpop.f32.mrf.mxu0  ;;  %v1940_v44 = vadd.f32 %v1931_v4, %v1924_v45  ;;  %v2341_v60 = vmov 1966171168  }
 0x5b1   : > { %v2066_v26 = vadd.f32 %v2015_v23, %v1937_v3  ;;  %v2056_v52 = vadd.f32 %v2055_v5, %v1949_v63  ;;  %v2064_v16 = vadd.f32 %v2054_v2, %v1935_v46  ;;  %v2017_v43 = vadd.f32 %v2016_v22, %v1953_v0  ;;  %v2124_v45 = vpop.permute.xlu1 %2123 }
 0x5b2   : > { %v2057_v57 = vpop.f32.mrf.mxu1  ;;  %v2071_v42 = vmax.f32 %v2063_v41, 0.0  ;;  %v2086_v56 = vmul.f32 %v2080_v37, %v2070_v62  ;;  %v2137_v55 = vunpack.c.l.s4 %v2341_v60 }
 0x5b3   : > { %v2074_v54 = vmax.f32 %v2066_v26, 0.0  ;;  %v2065_v58 = vadd.f32 %v2056_v52, %v1936_v8  ;;  %v2058_v7 = vadd.f32 %v2057_v57, %v1953_v0  ;;  %v2067_v10 = vadd.f32 %v2017_v43, %v1938_v21 }
 0x5b4   : > { %v2059_v53 = vpop.f32.mrf.mxu1  ;;  %v2072_v13 = vmax.f32 %v2064_v16, 0.0  ;;  %v2087_v48 = vmul.f32 %v2080_v37, %v2071_v42  ;;  %v2138_v2 = vunpack.c.0.s8 %v2137_v55 }
 0x5b5   : > { %v2068_v59 = vadd.f32 %v2058_v7, %v1939_v40  ;;  %v2090_v33 = vmul.f32 %v2084_v34, %v2074_v54  ;;  %v2060_v6 = vadd.f32 %v2059_v53, %v1953_v0  ;;  %v2075_v35 = vmax.f32 %v2067_v10, 0.0 }
 0x5b6   : > { %v2073_v30 = vmax.f32 %v2065_v58, 0.0  ;;  %v2088_v15 = vmul.f32 %v2080_v37, %v2072_v13  ;;  %v3985_v7 = vlaneseq }
 0x5b7   : > { %v2076_v14 = vmax.f32 %v2068_v59, 0.0  ;;  %v2094_v50 = vadd.f32 %v2090_v33, %v2086_v56  ;;  %v2069_v31 = vadd.f32 %v2060_v6, %v1940_v44  ;;  %v2091_v39 = vmul.f32 %v2084_v34, %v2075_v35 }
 0x5b8   : > { %v2089_v20 = vmul.f32 %v2080_v37, %v2073_v30  ;;  %v3984_v37 = vld [vmem:[#allocation2_spill] sm:$0xff]  ;;  %vm2161_vm12 = vcmp.lt.s32.totalorder %v3985_v7, 512 }
 0x5b9   : > { %v2092_v63 = vmul.f32 %v2084_v34, %v2076_v14  ;;  %v2095_v36 = vrot.slane %v2094_v50, 4  ;;  %v2077_v17 = vmax.f32 %v2069_v31, 0.0  ;;  %v2101_v47 = vadd.f32 %v2091_v39, %v2087_v48 }
 0x5ba   : > { %v2141_v16 = vsub.s32 %v2138_v2, %v3984_v37 }
 0x5bb   : > { %v2108_v24 = vadd.f32 %v2092_v63, %v2088_v15  ;;  %v2093_v29 = vmul.f32 %v2084_v34, %v2077_v17  ;;  %v2096_v18 = vadd.f32 %v2095_v36, %v2094_v50  ;;  %v2102_v1 = vrot.slane %v2101_v47, 4 }
 0x5bd   : > { %v2109_v61 = vrot.slane %v2108_v24, 4  ;;  %v2115_v19 = vadd.f32 %v2093_v29, %v2089_v20  ;;  %v2097_v4 = vrot.slane %v2096_v18, 2  ;;  %v2103_v51 = vadd.f32 %v2102_v1, %v2101_v47 }
 0x5bf   : > { %v2116_v28 = vrot.slane %v2115_v19, 4  ;;  %v2098_v0 = vadd.f32 %v2097_v4, %v2096_v18  ;;  %v2110_v12 = vadd.f32 %v2109_v61, %v2108_v24  ;;  %v2104_v9 = vrot.slane %v2103_v51, 2 }
 0x5c1   : > { %v2117_v49 = vadd.f32 %v2116_v28, %v2115_v19  ;;  %v2099_v27 = vrot.slane %v2098_v0, 1  ;;  %v2111_v38 = vrot.slane %v2110_v12, 2  ;;  %v2105_v32 = vadd.f32 %v2104_v9, %v2103_v51 }
 0x5c3   : > { %v2112_v25 = vadd.f32 %v2111_v38, %v2110_v12  ;;  %v2118_v46 = vrot.slane %v2117_v49, 2  ;;  %v2106_v11 = vrot.slane %v2105_v32, 1  ;;  %v2100_v3 = vadd.f32 %v2099_v27, %v2098_v0 }
 0x5c5   : > { %v2113_v23 = vrot.slane %v2112_v25, 1  ;;  %v2119_v62 = vadd.f32 %v2118_v46, %v2117_v49  ;;  %v2107_v41 = vadd.f32 %v2106_v11, %v2105_v32  ;;  %v2126_v52 = vadd.f32 %v2124_v45, %v2100_v3 }
 0x5c7   : > { %v2114_v5 = vadd.f32 %v2113_v23, %v2112_v25  ;;  %v2120_v22 = vrot.slane %v2119_v62, 1  ;;  %v2127_v8 = vadd.f32 %v2124_v45, %v2107_v41 }
 0x5c9   : > { %v2121_v26 = vadd.f32 %v2120_v22, %v2119_v62  ;;  %v2128_v21 = vadd.f32 %v2124_v45, %v2114_v5  ;;  %v2134_v57 = vcombine.low %v2126_v52, %v2127_v8 }
 0x5cb   : > { %v2129_v43 = vadd.f32 %v2124_v45, %v2121_v26  ;;  %v2142_v40 = vrot.slane %v2134_v57, %v2141_v16 }
 0x5cd   : > { %v2135_v34 = vcombine.low %v2128_v21, %v2129_v43 }
 0x5cf   : > { %v2149_v54 = vrot.slane %v2135_v34, %v2141_v16 }
 0x5d1   : > { %v2150_v58 = vcombine.low %v2142_v40, %v2149_v54 }
 0x5d3   : > { %v2157_v44 = vrot.slane %v2150_v58, %v2141_v16 }
 0x5d5   : > { %2163 = vst.msk [vmem:[%s347_s17] sm:$0xf] %vm2161_vm12, %v2157_v44 }
 0x5d6 PF: > { %s19_s30 = sadd.s32 1, %s2322_s30  }
 0x5d7   : > { %p16_p4 = scmp.ge.s32.totalorder %s19_s30, 4  }
 0x5d9   :  { %18 = sbr.rel (!%p16_p4) target bundleno = 1 (0x1), region = 90 }

</bundles_post_ra>
